<compile_context>
chip_gen: v7x
topology: tpu7x:2x2x1
jax: 0.10.0
libtpu: 0.0.40
codegen_flags: <defaults>
</compile_context>

<pallas_src>
import jax
import jax.numpy as jnp
from jax.experimental import pallas as pl
from jax.experimental.pallas import tpu as pltpu

HIDDEN = 800
LANE = 128
HIDDEN_PAD = ((HIDDEN + LANE - 1) // LANE) * LANE  # 896 = 7 * 128
BN_EPS = 1e-5


def _bn_relu(h, gamma, beta):
    """Training-mode BatchNorm1d (biased variance over the batch) + ReLU, f32."""
    m = jnp.mean(h, axis=0, keepdims=True)
    m2 = jnp.mean(h * h, axis=0, keepdims=True)
    var = m2 - m * m                       # single-pass (biased) variance
    h = (h - m) * jax.lax.rsqrt(var + BN_EPS)
    return jnp.maximum(h * gamma + beta, 0.0)


def pendulum_decoder_kernel(
    z_ref,
    w1_ref, g1_ref, be1_ref,
    w2_ref, g2_ref, be2_ref,
    w3_ref, b3_ref,
    o_ref,
):
    # Layer 1: Linear (bias cancelled by BN mean subtraction) -> BN -> ReLU
    z = z_ref[...].astype(jnp.bfloat16)
    h = jnp.dot(z, w1_ref[...], preferred_element_type=jnp.float32)
    h = _bn_relu(h, g1_ref[...], be1_ref[...])

    # Layer 2: Linear (bias cancelled by BN) -> BN -> ReLU
    h = jnp.dot(h.astype(jnp.bfloat16), w2_ref[...],
                preferred_element_type=jnp.float32)
    h = _bn_relu(h, g2_ref[...], be2_ref[...])

    # Layer 3: Linear + bias -> Sigmoid
    h = jnp.dot(h.astype(jnp.bfloat16), w3_ref[...],
                preferred_element_type=jnp.float32)
    h = h + b3_ref[...]
    o_ref[...] = jax.nn.sigmoid(h).astype(o_ref.dtype)


def _full_spec(shape):
    ndim = len(shape)
    return pl.BlockSpec(shape, lambda *_, _n=ndim: (0,) * _n)


def pendulum_decoder(z, params):
    """z: (B, dim_in) f32.  params: dict produced by init_params()."""
    B, _ = z.shape
    dim_out = params["dim_out"]
    dim_out_pad = params["w3"].shape[1]

    args = (
        z,
        params["w1"], params["g1"], params["be1"],
        params["w2"], params["g2"], params["be2"],
        params["w3"], params["b3"],
    )

    out = pl.pallas_call(
        pendulum_decoder_kernel,
        out_shape=jax.ShapeDtypeStruct((B, dim_out_pad), jnp.float32),
        in_specs=[_full_spec(a.shape) for a in args],
        out_specs=_full_spec((B, dim_out_pad)),
        compiler_params=pltpu.CompilerParams(vmem_limit_bytes=16 << 20),
    )(*args)

    return out[:, :dim_out] if dim_out_pad != dim_out else out


def init_params(key, dim_in, dim_out):
    """Deterministic synthetic parameters.

    Linear weights are (in_features, out_features) (transpose of PyTorch's
    (out, in)), zero-padded on the 800-feature axis to 896 and on dim_out to a
    128 multiple, and cast to bf16.  BN gamma/beta and the final bias stay f32.
    b1/b2 are omitted: mathematically cancelled by training-mode BatchNorm.
    """
    ks = jax.random.split(key, 4)
    s = 0.05
    dim_out_pad = ((dim_out + LANE - 1) // LANE) * LANE

    # Raw (unpadded, f32) parameters — kept for the pure-JAX reference check.
    w1 = s * jax.random.normal(ks[0], (dim_in, HIDDEN), jnp.float32)
    w2 = s * jax.random.normal(ks[1], (HIDDEN, HIDDEN), jnp.float32)
    w3 = s * jax.random.normal(ks[2], (HIDDEN, dim_out), jnp.float32)
    b3 = s * jax.random.normal(ks[3], (dim_out,), jnp.float32)
    g1 = jnp.ones((HIDDEN,), jnp.float32)
    be1 = jnp.zeros((HIDDEN,), jnp.float32)
    g2 = jnp.ones((HIDDEN,), jnp.float32)
    be2 = jnp.zeros((HIDDEN,), jnp.float32)

    hp = HIDDEN_PAD - HIDDEN
    op = dim_out_pad - dim_out

    params = {
        "dim_out": dim_out,
        # bf16 weights, feature axes padded to lane multiples with zeros.
        "w1": jnp.pad(w1, ((0, 0), (0, hp))).astype(jnp.bfloat16),
        "w2": jnp.pad(w2, ((0, hp), (0, hp))).astype(jnp.bfloat16),
        "w3": jnp.pad(w3, ((0, hp), (0, op))).astype(jnp.bfloat16),
        # f32 BN params / final bias, padded with zeros, (1, N) lane-major.
        "g1": jnp.pad(g1, (0, hp)).reshape(1, HIDDEN_PAD),
        "be1": jnp.pad(be1, (0, hp)).reshape(1, HIDDEN_PAD),
        "g2": jnp.pad(g2, (0, hp)).reshape(1, HIDDEN_PAD),
        "be2": jnp.pad(be2, (0, hp)).reshape(1, HIDDEN_PAD),
        "b3": jnp.pad(b3, (0, op)).reshape(1, dim_out_pad),
        # raw f32 copies for the reference implementation
        "ref": {"w1": w1, "w2": w2, "w3": w3, "b3": b3,
                "g1": g1, "be1": be1, "g2": g2, "be2": be2},
    }
    return params


def pendulum_decoder_ref(z, params):
    """Pure-JAX f32 reference (training-mode BN, biases b1/b2 = 0)."""
    r = params["ref"]

    def bn_relu(h, g, b):
        m = jnp.mean(h, axis=0, keepdims=True)
        v = jnp.mean((h - m) ** 2, axis=0, keepdims=True)
        return jnp.maximum((h - m) / jnp.sqrt(v + BN_EPS) * g + b, 0.0)

    h = bn_relu(z @ r["w1"], r["g1"], r["be1"])
    h = bn_relu(h @ r["w2"], r["g2"], r["be2"])
    return jax.nn.sigmoid(h @ r["w3"] + r["b3"])


if __name__ == "__main__":
    B, DIM_IN, DIM_OUT = 8, 8, 256  # pendulum latent -> flattened image

    key = jax.random.PRNGKey(0)
    kz, kp = jax.random.split(key)
    z = jax.random.normal(kz, (B, DIM_IN), jnp.float32)
    params = init_params(kp, DIM_IN, DIM_OUT)

    out = pendulum_decoder(z, params)
    jax.block_until_ready(out)

    assert out.shape == (B, DIM_OUT) and out.dtype == jnp.float32
    # sigmoid output must lie in (0, 1)
    assert bool(jnp.all(out > 0.0)) and bool(jnp.all(out < 1.0))
    # agree with f32 reference up to bf16 weight quantization
    ref = pendulum_decoder_ref(z, params)
    assert bool(jnp.max(jnp.abs(out - ref)) < 5e-2)
    print("KERNEL_OK")
</pallas_src>

<mosaic_0001>
module attributes {stable_mosaic.version = 11 : i64} {
  func.func @pendulum_decoder_kernel(%arg0: memref<8x8xf32, #tpu.memory_space<vmem>>, %arg1: memref<8x896xbf16, #tpu.memory_space<vmem>>, %arg2: memref<1x896xf32, #tpu.memory_space<vmem>>, %arg3: memref<1x896xf32, #tpu.memory_space<vmem>>, %arg4: memref<896x896xbf16, #tpu.memory_space<vmem>>, %arg5: memref<1x896xf32, #tpu.memory_space<vmem>>, %arg6: memref<1x896xf32, #tpu.memory_space<vmem>>, %arg7: memref<896x256xbf16, #tpu.memory_space<vmem>>, %arg8: memref<1x256xf32, #tpu.memory_space<vmem>>, %arg9: memref<8x256xf32, #tpu.memory_space<vmem>>) attributes {dimension_semantics = [], scalar_prefetch = 0 : i64, scratch_operands = 0 : i64, tpu.core_type = #tpu.core_type<tc>} {
    %c0 = arith.constant 0 : index
    %c0_0 = arith.constant 0 : index
    %0 = vector.load %arg0[%c0, %c0_0] : memref<8x8xf32, #tpu.memory_space<vmem>>, vector<8x8xf32>
    %1 = arith.truncf %0 : vector<8x8xf32> to vector<8x8xbf16>
    %c0_1 = arith.constant 0 : index
    %c0_2 = arith.constant 0 : index
    %2 = vector.load %arg1[%c0_1, %c0_2] : memref<8x896xbf16, #tpu.memory_space<vmem>>, vector<8x896xbf16>
    %cst = arith.constant dense<0.000000e+00> : vector<8x896xf32>
    %3 = tpu.matmul %1, %2, %cst {dimension_numbers = #tpu.dot_dimension_numbers<[1], [0], [0], [1], [0, 0, 1, 1], [], []>} : vector<8x8xbf16>, vector<8x896xbf16>, vector<8x896xf32> -> vector<8x896xf32>
    %c0_3 = arith.constant 0 : index
    %c0_4 = arith.constant 0 : index
    %4 = vector.load %arg2[%c0_3, %c0_4] : memref<1x896xf32, #tpu.memory_space<vmem>>, vector<1x896xf32>
    %c0_5 = arith.constant 0 : index
    %c0_6 = arith.constant 0 : index
    %5 = vector.load %arg3[%c0_5, %c0_6] : memref<1x896xf32, #tpu.memory_space<vmem>>, vector<1x896xf32>
    %cst_7 = arith.constant dense<0.000000e+00> : vector<896xf32>
    %6 = vector.multi_reduction <add>, %3, %cst_7 [0] : vector<8x896xf32> to vector<896xf32>
    %7 = vector.shape_cast %6 : vector<896xf32> to vector<1x896xf32>
    %cst_8 = arith.constant 8.000000e+00 : f32
    %8 = vector.broadcast %cst_8 : f32 to vector<1x896xf32>
    %9 = arith.divf %7, %8 : vector<1x896xf32>
    %10 = arith.mulf %3, %3 : vector<8x896xf32>
    %cst_9 = arith.constant dense<0.000000e+00> : vector<896xf32>
    %11 = vector.multi_reduction <add>, %10, %cst_9 [0] : vector<8x896xf32> to vector<896xf32>
    %12 = vector.shape_cast %11 : vector<896xf32> to vector<1x896xf32>
    %cst_10 = arith.constant 8.000000e+00 : f32
    %13 = vector.broadcast %cst_10 : f32 to vector<1x896xf32>
    %14 = arith.divf %12, %13 : vector<1x896xf32>
    %15 = arith.mulf %9, %9 : vector<1x896xf32>
    %16 = arith.subf %14, %15 : vector<1x896xf32>
    %17 = vector.broadcast %9 : vector<1x896xf32> to vector<8x896xf32>
    %18 = arith.subf %3, %17 : vector<8x896xf32>
    %cst_11 = arith.constant 9.99999974E-6 : f32
    %19 = vector.broadcast %cst_11 : f32 to vector<1x896xf32>
    %20 = arith.addf %16, %19 : vector<1x896xf32>
    %21 = math.rsqrt %20 : vector<1x896xf32>
    %22 = vector.broadcast %21 : vector<1x896xf32> to vector<8x896xf32>
    %23 = arith.mulf %18, %22 : vector<8x896xf32>
    %24 = vector.broadcast %4 : vector<1x896xf32> to vector<8x896xf32>
    %25 = arith.mulf %23, %24 : vector<8x896xf32>
    %26 = vector.broadcast %5 : vector<1x896xf32> to vector<8x896xf32>
    %27 = arith.addf %25, %26 : vector<8x896xf32>
    %cst_12 = arith.constant 0.000000e+00 : f32
    %28 = vector.broadcast %cst_12 : f32 to vector<8x896xf32>
    %29 = arith.maximumf %27, %28 : vector<8x896xf32>
    %30 = arith.truncf %29 : vector<8x896xf32> to vector<8x896xbf16>
    %c0_13 = arith.constant 0 : index
    %c0_14 = arith.constant 0 : index
    %31 = vector.load %arg4[%c0_13, %c0_14] : memref<896x896xbf16, #tpu.memory_space<vmem>>, vector<896x896xbf16>
    %cst_15 = arith.constant dense<0.000000e+00> : vector<8x896xf32>
    %32 = tpu.matmul %30, %31, %cst_15 {dimension_numbers = #tpu.dot_dimension_numbers<[1], [0], [0], [1], [0, 0, 1, 1], [], []>} : vector<8x896xbf16>, vector<896x896xbf16>, vector<8x896xf32> -> vector<8x896xf32>
    %c0_16 = arith.constant 0 : index
    %c0_17 = arith.constant 0 : index
    %33 = vector.load %arg5[%c0_16, %c0_17] : memref<1x896xf32, #tpu.memory_space<vmem>>, vector<1x896xf32>
    %c0_18 = arith.constant 0 : index
    %c0_19 = arith.constant 0 : index
    %34 = vector.load %arg6[%c0_18, %c0_19] : memref<1x896xf32, #tpu.memory_space<vmem>>, vector<1x896xf32>
    %cst_20 = arith.constant dense<0.000000e+00> : vector<896xf32>
    %35 = vector.multi_reduction <add>, %32, %cst_20 [0] : vector<8x896xf32> to vector<896xf32>
    %36 = vector.shape_cast %35 : vector<896xf32> to vector<1x896xf32>
    %cst_21 = arith.constant 8.000000e+00 : f32
    %37 = vector.broadcast %cst_21 : f32 to vector<1x896xf32>
    %38 = arith.divf %36, %37 : vector<1x896xf32>
    %39 = arith.mulf %32, %32 : vector<8x896xf32>
    %cst_22 = arith.constant dense<0.000000e+00> : vector<896xf32>
    %40 = vector.multi_reduction <add>, %39, %cst_22 [0] : vector<8x896xf32> to vector<896xf32>
    %41 = vector.shape_cast %40 : vector<896xf32> to vector<1x896xf32>
    %cst_23 = arith.constant 8.000000e+00 : f32
    %42 = vector.broadcast %cst_23 : f32 to vector<1x896xf32>
    %43 = arith.divf %41, %42 : vector<1x896xf32>
    %44 = arith.mulf %38, %38 : vector<1x896xf32>
    %45 = arith.subf %43, %44 : vector<1x896xf32>
    %46 = vector.broadcast %38 : vector<1x896xf32> to vector<8x896xf32>
    %47 = arith.subf %32, %46 : vector<8x896xf32>
    %cst_24 = arith.constant 9.99999974E-6 : f32
    %48 = vector.broadcast %cst_24 : f32 to vector<1x896xf32>
    %49 = arith.addf %45, %48 : vector<1x896xf32>
    %50 = math.rsqrt %49 : vector<1x896xf32>
    %51 = vector.broadcast %50 : vector<1x896xf32> to vector<8x896xf32>
    %52 = arith.mulf %47, %51 : vector<8x896xf32>
    %53 = vector.broadcast %33 : vector<1x896xf32> to vector<8x896xf32>
    %54 = arith.mulf %52, %53 : vector<8x896xf32>
    %55 = vector.broadcast %34 : vector<1x896xf32> to vector<8x896xf32>
    %56 = arith.addf %54, %55 : vector<8x896xf32>
    %cst_25 = arith.constant 0.000000e+00 : f32
    %57 = vector.broadcast %cst_25 : f32 to vector<8x896xf32>
    %58 = arith.maximumf %56, %57 : vector<8x896xf32>
    %59 = arith.truncf %58 : vector<8x896xf32> to vector<8x896xbf16>
    %c0_26 = arith.constant 0 : index
    %c0_27 = arith.constant 0 : index
    %60 = vector.load %arg7[%c0_26, %c0_27] : memref<896x256xbf16, #tpu.memory_space<vmem>>, vector<896x256xbf16>
    %cst_28 = arith.constant dense<0.000000e+00> : vector<8x256xf32>
    %61 = tpu.matmul %59, %60, %cst_28 {dimension_numbers = #tpu.dot_dimension_numbers<[1], [0], [0], [1], [0, 0, 1, 1], [], []>} : vector<8x896xbf16>, vector<896x256xbf16>, vector<8x256xf32> -> vector<8x256xf32>
    %c0_29 = arith.constant 0 : index
    %c0_30 = arith.constant 0 : index
    %62 = vector.load %arg8[%c0_29, %c0_30] : memref<1x256xf32, #tpu.memory_space<vmem>>, vector<1x256xf32>
    %63 = vector.broadcast %62 : vector<1x256xf32> to vector<8x256xf32>
    %64 = arith.addf %61, %63 : vector<8x256xf32>
    %65 = arith.negf %64 : vector<8x256xf32>
    %66 = math.exp %65 : vector<8x256xf32>
    %cst_31 = arith.constant 1.000000e+00 : f32
    %67 = vector.broadcast %cst_31 : f32 to vector<8x256xf32>
    %68 = arith.addf %67, %66 : vector<8x256xf32>
    %69 = arith.divf %67, %68 : vector<8x256xf32>
    %c0_32 = arith.constant 0 : index
    %c0_33 = arith.constant 0 : index
    %70 = vector.load %arg9[%c0_32, %c0_33] : memref<8x256xf32, #tpu.memory_space<vmem>>, vector<8x256xf32>
    tpu.vector_store %arg9[%c0_32, %c0_33], %69 {strides = array<i32>} : memref<8x256xf32, #tpu.memory_space<vmem>>, vector<8x256xf32>,
    return
  }
}

</mosaic_0001>

<bundles_post_ra>
// kernel: tpu_custom_call.1
= control target key start
LH: loop header
LB: loop body
LE: loop exit
PB: predicated region body
PF: predicated region fallthrough
CT: control target
= control target key end

     0   :  { %14 = vsyncpa [#allocation3], 0  ;;  %s7033_s0 = inlined_call_operand.hbm [shape: f32[8,8], index: 0, kind: input, shape index: {}]   ;;  %s7034_s1 = inlined_call_operand.hbm [shape: bf16[8,896], index: 1, kind: input, shape index: {}]   ;;  %s7035_s2 = inlined_call_operand.hbm [shape: f32[1,896], index: 2, kind: input, shape index: {}]   ;;  %s7036_s3 = inlined_call_operand.hbm [shape: f32[1,896], index: 3, kind: input, shape index: {}]   ;;  %s7037_s4 = inlined_call_operand.hbm [shape: bf16[896,896], index: 4, kind: input, shape index: {}]   ;;  %s7038_s5 = inlined_call_operand.hbm [shape: f32[1,896], index: 5, kind: input, shape index: {}]   ;;  %s7039_s6 = inlined_call_operand.hbm [shape: f32[1,896], index: 6, kind: input, shape index: {}]   ;;  %s7040_s7 = inlined_call_operand.hbm [shape: bf16[896,256], index: 7, kind: input, shape index: {}]   ;;  %s7041_s8 = inlined_call_operand.hbm [shape: f32[1,256], index: 8, kind: input, shape index: {}]   ;;  %s7042_s9 = inlined_call_operand.hbm [shape: f32[8,256], index: 9, kind: output, shape index: {}]  }
   0x1   :  { %15 = vsyncpa [#allocation6], 0 }
   0x2   :  { %16 = vsyncpa [#allocation9], 0 }
   0x3   :  { %17 = vsyncpa [#allocation12], 0 }
   0x4   :  { %18 = vsyncpa [#allocation15], 0 }
   0x5   :  { %19 = vsyncpa [#allocation4], 0  ;;  %s6542_s30 = smov [#allocation5]   ;;  %s6543_s11 = smov [#allocation8]  }
   0x6   :  { %s36_s10 = sshll.u32 %s6542_s30, 4  ;;  %s56_s12 = sshll.u32 %s6543_s11, 4  ;;  %s37_s10 = int_to_ptr.vmem [resolvable:$true] %s36_s10  ;;  %s57_s12 = int_to_ptr.vmem [resolvable:$true] %s56_s12 }
   0x7   :  { %s6310_s15 = scalar_lea.hbm %s7034_s1, 448 }
   0x8   :  { %p6311_p0 = scmp.ne.s32.totalorder %s7034_s1, %s6310_s15  ;;  %p6314_p1 = scmp.lt.u32.totalorder %s6310_s15, %s7034_s1 }
   0xa   :  { %p6316_p2 = pnand %p6314_p1, %p6311_p0 }
   0xc   :  { %6319 = shalt.err (!%p6316_p2)
}
   0xd   :  { %s6320_s20 = scalar_lea.vmem %s37_s10, 448  ;;  %p6325_p4 = scmp.lt.s32.totalorder %s37_s10, %s37_s10 }
   0xe   :  { %p6321_p3 = scmp.ne.s32.totalorder %s37_s10, %s6320_s20  ;;  %p6326_p5 = scmp.lt.s32.totalorder %s6320_s20, %s6320_s20 }
  0x10   :  { %p6327_p6 = por %p6326_p5, %p6325_p4 }
  0x12   :  { %p6328_p7 = pnand %p6327_p6, %p6321_p3 }
  0x14   :  { %6331 = shalt.err (!%p6328_p7)
}
  0x15   :  { %39 = dma.hbm_to_vmem [thread:$0]  %s7034_s1, 448, %s37_s10, [#allocation6]  }
  0x16   :  { %s6332_s25 = scalar_lea.hbm %s7036_s3, 112 }
  0x17   :  { %p6333_p8 = scmp.ne.s32.totalorder %s7036_s3, %s6332_s25  ;;  %p6336_p9 = scmp.lt.u32.totalorder %s6332_s25, %s7036_s3 }
  0x19   :  { %p6338_p10 = pnand %p6336_p9, %p6333_p8 }
  0x1b   :  { %6341 = shalt.err (!%p6338_p10)
}
  0x1c   :  { %s6342_s30 = scalar_lea.vmem %s57_s12, 112  ;;  %s6346_s11 = scalar_lea.vmem %s57_s12, 128 }
  0x1d   :  { %p6343_p11 = scmp.ne.s32.totalorder %s57_s12, %s6342_s30  ;;  %p6347_p12 = scmp.lt.s32.totalorder %s57_s12, %s57_s12 }
  0x1e   :  { %p6348_p13 = scmp.lt.s32.totalorder %s6346_s11, %s6342_s30 }
  0x20   :  { %p6349_p0 = por %p6348_p13, %p6347_p12 }
  0x22   :  { %p6350_p1 = pnand %p6349_p0, %p6343_p11 }
  0x24   :  { %6353 = shalt.err (!%p6350_p1)
}
  0x25   :  { %59 = dma.hbm_to_vmem [thread:$0]  %s7036_s3, 112, %s57_s12, [#allocation9]  }
  0x26   :  { %s6544_s13 = smov [#allocation11]   ;;  %s6545_s15 = smov [#allocation14]  }
  0x27   :  { %s78_s14 = sshll.u32 %s6544_s13, 4  ;;  %s97_s16 = sshll.u32 %s6545_s15, 4  ;;  %s79_s14 = int_to_ptr.vmem [resolvable:$true] %s78_s14  ;;  %s6633_s16 = int_to_ptr.vmem [resolvable:$true] %s97_s16 }
  0x28   :  { %s6354_s19 = scalar_lea.hbm %s7038_s5, 112 }
  0x29   :  { %p6355_p2 = scmp.ne.s32.totalorder %s7038_s5, %s6354_s19  ;;  %p6358_p3 = scmp.lt.u32.totalorder %s6354_s19, %s7038_s5 }
  0x2b   :  { %p6360_p4 = pnand %p6358_p3, %p6355_p2 }
  0x2d   :  { %6363 = shalt.err (!%p6360_p4)
}
  0x2e   :  { %s6364_s3 = scalar_lea.vmem %s79_s14, 112  ;;  %s6368_s12 = scalar_lea.vmem %s79_s14, 128 }
  0x2f   :  { %p6365_p5 = scmp.ne.s32.totalorder %s79_s14, %s6364_s3  ;;  %p6369_p6 = scmp.lt.s32.totalorder %s79_s14, %s79_s14 }
  0x30   :  { %p6370_p7 = scmp.lt.s32.totalorder %s6368_s12, %s6364_s3 }
  0x32   :  { %p6371_p8 = por %p6370_p7, %p6369_p6 }
  0x34   :  { %p6372_p9 = pnand %p6371_p8, %p6365_p5 }
  0x36   :  { %6375 = shalt.err (!%p6372_p9)
}
  0x37   :  { %81 = dma.hbm_to_vmem [thread:$0]  %s7038_s5, 112, %s79_s14, [#allocation12]  }
  0x38   :  { %s6376_s28 = scalar_lea.hbm %s7040_s7, 14336 }
  0x39   :  { %p6377_p10 = scmp.ne.s32.totalorder %s7040_s7, %s6376_s28  ;;  %p6380_p11 = scmp.lt.u32.totalorder %s6376_s28, %s7040_s7 }
  0x3b   :  { %p6382_p12 = pnand %p6380_p11, %p6377_p10 }
  0x3d   :  { %6385 = shalt.err (!%p6382_p12)
}
  0x3e   :  { %s6386_s10 = scalar_lea.vmem %s6633_s16, 14336  ;;  %p6391_p0 = scmp.lt.s32.totalorder %s6633_s16, %s6633_s16 }
  0x3f   :  { %p6387_p13 = scmp.ne.s32.totalorder %s6633_s16, %s6386_s10  ;;  %p6392_p1 = scmp.lt.s32.totalorder %s6386_s10, %s6386_s10 }
  0x41   :  { %p6393_p2 = por %p6392_p1, %p6391_p0 }
  0x43   :  { %p6394_p3 = pnand %p6393_p2, %p6387_p13 }
  0x45   :  { %6397 = shalt.err (!%p6394_p3)
}
  0x46   :  { %s6546_s5 = smov 128   ;;  %s6547_s13 = smov 8  }
  0x47   :  { %103 = dma.hbm_to_vmem [thread:$0]  %s7040_s7, 14336, %s6633_s16, [#allocation15], %s6546_s5, %s6546_s5, %s6547_s13  }
  0x48   :  { %s6548_s17 = smov [#allocation2]   ;;  %s6549_s19 = smov [#allocation7]  }
  0x49   :  { %s26_s18 = sshll.u32 %s6548_s17, 4  ;;  %s46_s20 = sshll.u32 %s6549_s19, 4  ;;  %s27_s18 = int_to_ptr.vmem [resolvable:$true] %s26_s18  ;;  %s47_s20 = int_to_ptr.vmem [resolvable:$true] %s46_s20 }
  0x4a   :  { %s6398_s23 = scalar_lea.hbm %s7033_s0, 128 }
  0x4b   :  { %p6399_p4 = scmp.ne.s32.totalorder %s7033_s0, %s6398_s23  ;;  %p6402_p5 = scmp.lt.u32.totalorder %s6398_s23, %s7033_s0 }
  0x4d   :  { %p6404_p6 = pnand %p6402_p5, %p6399_p4 }
  0x4f   :  { %6407 = shalt.err (!%p6404_p6)
}
  0x50   :  { %s6408_s7 = scalar_lea.vmem %s27_s18, 128  ;;  %p6413_p8 = scmp.lt.s32.totalorder %s27_s18, %s27_s18 }
  0x51   :  { %p6409_p7 = scmp.ne.s32.totalorder %s27_s18, %s6408_s7  ;;  %p6414_p9 = scmp.lt.s32.totalorder %s6408_s7, %s6408_s7 }
  0x53   :  { %p6415_p10 = por %p6414_p9, %p6413_p8 }
  0x55   :  { %p6416_p11 = pnand %p6415_p10, %p6409_p7 }
  0x57   :  { %6419 = shalt.err (!%p6416_p11)
}
  0x58   :  { %29 = dma.hbm_to_vmem [thread:$0]  %s7033_s0, 128, %s27_s18, [#allocation3]  }
  0x59   :  { %s6420_s29 = scalar_lea.hbm %s7035_s2, 112 }
  0x5a   :  { %p6421_p12 = scmp.ne.s32.totalorder %s7035_s2, %s6420_s29  ;;  %p6424_p13 = scmp.lt.u32.totalorder %s6420_s29, %s7035_s2 }
  0x5c   :  { %p6426_p0 = pnand %p6424_p13, %p6421_p12 }
  0x5e   :  { %6429 = shalt.err (!%p6426_p0)
}
  0x5f   :  { %s6430_s5 = scalar_lea.vmem %s47_s20, 112  ;;  %s6434_s13 = scalar_lea.vmem %s47_s20, 128 }
  0x60   :  { %p6431_p1 = scmp.ne.s32.totalorder %s47_s20, %s6430_s5  ;;  %p6435_p2 = scmp.lt.s32.totalorder %s47_s20, %s47_s20 }
  0x61   :  { %p6436_p3 = scmp.lt.s32.totalorder %s6434_s13, %s6430_s5 }
  0x63   :  { %p6437_p4 = por %p6436_p3, %p6435_p2 }
  0x65   :  { %p6438_p5 = pnand %p6437_p4, %p6431_p1 }
  0x67   :  { %6441 = shalt.err (!%p6438_p5)
}
  0x68   :  { %49 = dma.hbm_to_vmem [thread:$0]  %s7035_s2, 112, %s47_s20, [#allocation6]  }
  0x69   :  { %s6550_s15 = smov [#allocation10]   ;;  %s6442_s21 = scalar_lea.hbm %s7037_s4, 50176 }
  0x6a   :  { %s65_s17 = sshll.u32 %s6550_s15, 4  ;;  %p6443_p6 = scmp.ne.s32.totalorder %s7037_s4, %s6442_s21  ;;  %s66_s17 = int_to_ptr.vmem [resolvable:$true] %s65_s17 }
  0x6b   :  { %p6446_p7 = scmp.lt.u32.totalorder %s6442_s21, %s7037_s4 }
  0x6d   :  { %p6448_p8 = pnand %p6446_p7, %p6443_p6 }
  0x6f   :  { %6451 = shalt.err (!%p6448_p8)
}
  0x70   :  { %s6452_s24 = scalar_lea.vmem %s66_s17, 50176  ;;  %p6457_p10 = scmp.lt.s32.totalorder %s66_s17, %s66_s17 }
  0x71   :  { %p6453_p9 = scmp.ne.s32.totalorder %s66_s17, %s6452_s24  ;;  %p6458_p11 = scmp.lt.s32.totalorder %s6452_s24, %s6452_s24 }
  0x73   :  { %p6459_p12 = por %p6458_p11, %p6457_p10 }
  0x75   :  { %p6460_p13 = pnand %p6459_p12, %p6453_p9 }
  0x77   :  { %6463 = shalt.err (!%p6460_p13)
}
  0x78   :  { %s6551_s2 = smov 448   ;;  %s6552_s20 = smov 28  }
  0x79   :  { %71 = dma.hbm_to_vmem [thread:$0]  %s7037_s4, 50176, %s66_s17, [#allocation9], %s6551_s2, %s6551_s2, %s6552_s20  }
  0x7a   :  { %s6553_s16 = smov [#allocation13]   ;;  %s6554_s27 = smov [#allocation16]  }
  0x7b   :  { %s88_s26 = sshll.u32 %s6553_s16, 4  ;;  %s110_s28 = sshll.u32 %s6554_s27, 4  ;;  %s89_s26 = int_to_ptr.vmem [resolvable:$true] %s88_s26  ;;  %s111_s28 = int_to_ptr.vmem [resolvable:$true] %s110_s28 }
  0x7c   :  { %s6464_s11 = scalar_lea.hbm %s7039_s6, 112 }
  0x7d   :  { %p6465_p0 = scmp.ne.s32.totalorder %s7039_s6, %s6464_s11  ;;  %p6468_p1 = scmp.lt.u32.totalorder %s6464_s11, %s7039_s6 }
  0x7f   :  { %p6470_p2 = pnand %p6468_p1, %p6465_p0 }
  0x81   :  { %6473 = shalt.err (!%p6470_p2)
}
  0x82   :  { %s6474_s4 = scalar_lea.vmem %s89_s26, 112  ;;  %s6478_s0 = scalar_lea.vmem %s89_s26, 128 }
  0x83   :  { %p6475_p3 = scmp.ne.s32.totalorder %s89_s26, %s6474_s4  ;;  %p6479_p4 = scmp.lt.s32.totalorder %s89_s26, %s89_s26 }
  0x84   :  { %p6480_p5 = scmp.lt.s32.totalorder %s6478_s0, %s6474_s4 }
  0x86   :  { %p6481_p6 = por %p6480_p5, %p6479_p4 }
  0x88   :  { %p6482_p7 = pnand %p6481_p6, %p6475_p3 }
  0x8a   :  { %6485 = shalt.err (!%p6482_p7)
}
  0x8b   :  { %91 = dma.hbm_to_vmem [thread:$0]  %s7039_s6, 112, %s89_s26, [#allocation12]  }
  0x8c   :  { %s6486_s19 = scalar_lea.hbm %s7041_s8, 32 }
  0x8d   :  { %p6487_p8 = scmp.ne.s32.totalorder %s7041_s8, %s6486_s19  ;;  %p6490_p9 = scmp.lt.u32.totalorder %s6486_s19, %s7041_s8 }
  0x8f   :  { %p6492_p10 = pnand %p6490_p9, %p6487_p8 }
  0x91   :  { %6495 = shalt.err (!%p6492_p10)
}
  0x92   :  { %s6496_s12 = scalar_lea.vmem %s111_s28, 32  ;;  %p6501_p12 = scmp.lt.s32.totalorder %s111_s28, %s111_s28 }
  0x93   :  { %p6497_p11 = scmp.ne.s32.totalorder %s111_s28, %s6496_s12  ;;  %p6502_p13 = scmp.lt.s32.totalorder %s6496_s12, %s6496_s12 }
  0x95   :  { %p6503_p0 = por %p6502_p13, %p6501_p12 }
  0x97   :  { %p6504_p1 = pnand %p6503_p0, %p6497_p11 }
  0x99   :  { %6507 = shalt.err (!%p6504_p1)
}
  0x9a   :  { %113 = dma.hbm_to_vmem [thread:$0]  %s7041_s8, 32, %s111_s28, [#allocation15]  }
  0x9b   :  { %6530 = dma.done.wait [#allocation3], 128  }
  0x9c   :  { %6531 = vsyncadd [#allocation3], 4294967168 }
  0x9d   :  { %6532 = dma.done.wait [#allocation6], 560  }
  0x9e   :  { %6533 = vsyncadd [#allocation6], 4294966736 }
  0x9f   :  { %6534 = dma.done.wait [#allocation9], 50288  }
  0xa0   :  { %6535 = vsyncadd [#allocation9], 4294917008 }
  0xa1   :  { %6536 = dma.done.wait [#allocation12], 224  }
  0xa2   :  { %6537 = vsyncadd [#allocation12], 4294967072 }
  0xa3   :  { %6538 = dma.done.wait [#allocation15], 14368  }
  0xa4   :  { %6539 = vsyncadd [#allocation15], 4294952928  ;;  %v6555_v0 = vmov 0   ;;  %v144_v1 = vld [vmem:[#allocation5] sm:$0xff]  ;;  %vm170_vm0 = vcmask 1043456   ;;  %v145_v2 = vld [vmem:[#allocation5 + $0x8] sm:$0xff] }
  0xa5   :  { %224 = vmatprep.mubr.bf16.mxu0 %v6555_v0  ;;  %265 = vmatprep.mubr.bf16.mxu1 %v6555_v0  ;;  %v142_v3 = vld [vmem:[#allocation2] sm:$0xff]  ;;  %v4852_v4 = vcombine.high %v144_v1, %v144_v1  ;;  %v4854_v5 = vcombine.high %v145_v2, %v145_v2  ;;  %v4851_v6 = vcombine.low %v144_v1, %v144_v1  ;;  %v146_v8 = vld [vmem:[#allocation5 + $0x10] sm:$0xff]  ;;  %vm166_vm1 = vcmask 64512   ;;  %v5546_v20 = vld [vmem:[#allocation10] ss:$28 sps:$4 sm:$0xff]   ;;  %s6558_s8 = smov [#allocation17]  }
  0xa6   :  { %v4853_v7 = vcombine.low %v145_v2, %v145_v2  ;;  %v4856_v9 = vcombine.high %v146_v8, %v146_v8  ;;  %v4855_v10 = vcombine.low %v146_v8, %v146_v8  ;;  %v5545_v11 = vld [vmem:[#allocation5 + $0x18] ss:$0 sps:$4 sm:$0xff]   ;;  %v143_v14 = vpack.c.bf16 %v142_v3, %v142_v3  ;;  %v5548_v17 = vld [vmem:[#allocation10 + $0x4] ss:$28 sps:$4 sm:$0xff]   ;;  %v5554_v22 = vld [vmem:[#allocation10 + $0x3c] ss:$28 sps:$4 sm:$0xff]  }
  0xa7   :  { %4858 = vmatprep.subr.msk.bf16.mxu0 %vm170_vm0, %v4852_v4  ;;  %4860 = vmatprep.subr.msk.bf16.mxu1 %vm170_vm0, %v4854_v5  ;;  %v172_v12 = vsel %vm170_vm0, %v4851_v6, 0  ;;  %v6556_v16 = vmov 0.0   ;;  %v190_v18 = vsel %vm170_vm0, %v5545_v11, 0  ;;  %v5551_v19 = vld [vmem:[#allocation10 + $0x38c] ss:$28 sps:$4 sm:$0xff]   ;;  %vm6557_vm2 = vmmov 0  }
  0xa8   :  { %v178_v13 = vsel %vm170_vm0, %v4853_v7, 0  ;;  %193 = vmatpush1.bf16.msra.mxu0 %v172_v12  ;;  %v184_v15 = vsel %vm170_vm0, %v4855_v10, 0  ;;  %v5549_v21 = vld [vmem:[#allocation10 + $0x388] ss:$28 sps:$4 sm:$0xff]   ;;  %v5552_v24 = vld [vmem:[#allocation10 + $0x38] ss:$28 sps:$4 sm:$0xff]  }
  0xa9   :  { %234 = vmatpush1.bf16.msra.mxu1 %v178_v13  ;;  %4862 = vmatprep.subr.msk.bf16.mxu0 %vm170_vm0, %v4856_v9  ;;  %v5557_v23 = vld [vmem:[#allocation10 + $0x3c4] ss:$28 sps:$4 sm:$0xff]   ;;  %v5560_v26 = vld [vmem:[#allocation10 + $0x74] ss:$28 sps:$4 sm:$0xff]   ;;  %v5563_v27 = vld [vmem:[#allocation10 + $0x3fc] ss:$28 sps:$4 sm:$0xff]  }
  0xaa   :  { %5448 = vmatprep.subr.bf16.mxu1 %v6556_v16  ;;  %v5555_v25 = vld [vmem:[#allocation10 + $0x3c0] ss:$28 sps:$4 sm:$0xff]   ;;  %v5558_v28 = vld [vmem:[#allocation10 + $0x70] ss:$28 sps:$4 sm:$0xff]   ;;  %v5561_v29 = vld [vmem:[#allocation10 + $0x3f8] ss:$28 sps:$4 sm:$0xff]  }
  0xab   :  { %4859 = vmatmul.mubr.msk.bf16.vlgmr.msra.gmra.mrb[0].mxu0 %vm166_vm1, %v143_v14  ;;  %v5566_v30 = vld [vmem:[#allocation10 + $0xac] ss:$28 sps:$4 sm:$0xff]   ;;  %v5569_v31 = vld [vmem:[#allocation10 + $0x434] ss:$28 sps:$4 sm:$0xff]   ;;  %v5572_v34 = vld [vmem:[#allocation10 + $0xe4] ss:$28 sps:$4 sm:$0xff]  }
  0xac   :  { %4861 = vmatmul.mubr.msk.bf16.vlgmr.msra.gmra.mrb[0].mxu1 %vm166_vm1, %v143_v14  ;;  %275 = vmatpush1.bf16.msra.mxu0 %v184_v15  ;;  %v5564_v32 = vld [vmem:[#allocation10 + $0xa8] ss:$28 sps:$4 sm:$0xff]   ;;  %v5567_v33 = vld [vmem:[#allocation10 + $0x430] ss:$28 sps:$4 sm:$0xff]   ;;  %v5570_v36 = vld [vmem:[#allocation10 + $0xe0] ss:$28 sps:$4 sm:$0xff]  }
  0xad   :  { %306 = vmatprep.mubr.bf16.mxu0 %v6555_v0  ;;  %5449 = vmatpush3.bf16.msra.mxu1 %v190_v18  ;;  %v5575_v35 = vld [vmem:[#allocation10 + $0x46c] ss:$28 sps:$4 sm:$0xff]   ;;  %v5578_v38 = vld [vmem:[#allocation10 + $0x11c] ss:$28 sps:$4 sm:$0xff]   ;;  %v5581_v39 = vld [vmem:[#allocation10 + $0x4a4] ss:$28 sps:$4 sm:$0xff]  }
  0xae   :  { %5450 = vmatprep.mubr.msk.bf16.mxu1 %vm6557_vm2, %v6556_v16  ;;  %3069 = vmatprep.subr.bf16.mxu0 %v5548_v17  ;;  %v5573_v37 = vld [vmem:[#allocation10 + $0x468] ss:$28 sps:$4 sm:$0xff]   ;;  %v5576_v40 = vld [vmem:[#allocation10 + $0x118] ss:$28 sps:$4 sm:$0xff]   ;;  %v5579_v41 = vld [vmem:[#allocation10 + $0x4a0] ss:$28 sps:$4 sm:$0xff]  }
  0xaf   :  { %3274 = vmatprep.subr.bf16.mxu1 %v5551_v19  ;;  %v5584_v42 = vld [vmem:[#allocation10 + $0x154] ss:$28 sps:$4 sm:$0xff]   ;;  %v5587_v43 = vld [vmem:[#allocation10 + $0x4dc] ss:$28 sps:$4 sm:$0xff]   ;;  %v5590_v46 = vld [vmem:[#allocation10 + $0x18c] ss:$28 sps:$4 sm:$0xff]  }
  0xb0   :  { %v5582_v44 = vld [vmem:[#allocation10 + $0x150] ss:$28 sps:$4 sm:$0xff]   ;;  %v5585_v45 = vld [vmem:[#allocation10 + $0x4d8] ss:$28 sps:$4 sm:$0xff]   ;;  %v5588_v48 = vld [vmem:[#allocation10 + $0x188] ss:$28 sps:$4 sm:$0xff]  }
  0xb1   :  { %v5593_v47 = vld [vmem:[#allocation10 + $0x514] ss:$28 sps:$4 sm:$0xff]   ;;  %v5596_v50 = vld [vmem:[#allocation10 + $0x1c4] ss:$28 sps:$4 sm:$0xff]   ;;  %v5599_v51 = vld [vmem:[#allocation10 + $0x54c] ss:$28 sps:$4 sm:$0xff]  }
  0xb2   :  { %v5591_v49 = vld [vmem:[#allocation10 + $0x510] ss:$28 sps:$4 sm:$0xff]   ;;  %v5594_v52 = vld [vmem:[#allocation10 + $0x1c0] ss:$28 sps:$4 sm:$0xff]   ;;  %v5597_v53 = vld [vmem:[#allocation10 + $0x548] ss:$28 sps:$4 sm:$0xff]  }
  0xb3   :  { %4863 = vmatmul.mubr.msk.bf16.vlgmr.msra.gmra.mrb[4].mxu0 %vm166_vm1, %v143_v14  ;;  %v5602_v54 = vld [vmem:[#allocation10 + $0x1fc] ss:$28 sps:$4 sm:$0xff]   ;;  %v5605_v55 = vld [vmem:[#allocation10 + $0x584] ss:$28 sps:$4 sm:$0xff]   ;;  %v5608_v58 = vld [vmem:[#allocation10 + $0x234] ss:$28 sps:$4 sm:$0xff]  }
  0xb4   :  { %5451 = vmatmul.mubr.msk.bf16.vlgmr.msra.gmra.mrb[4].mxu1 %vm166_vm1, %v143_v14  ;;  %3070 = vmatpush1.bf16.msra.mxu0 %v5546_v20  ;;  %v5600_v56 = vld [vmem:[#allocation10 + $0x1f8] ss:$28 sps:$4 sm:$0xff]   ;;  %v5603_v57 = vld [vmem:[#allocation10 + $0x580] ss:$28 sps:$4 sm:$0xff]   ;;  %v5606_v60 = vld [vmem:[#allocation10 + $0x230] ss:$28 sps:$4 sm:$0xff]  }
  0xb5   :  { %3275 = vmatpush1.bf16.msra.mxu1 %v5549_v21  ;;  %3071 = vmatprep.subr.bf16.mxu0 %v5554_v22  ;;  %v5611_v59 = vld [vmem:[#allocation10 + $0x5bc] ss:$28 sps:$4 sm:$0xff]   ;;  %v5614_v62 = vld [vmem:[#allocation10 + $0x26c] ss:$28 sps:$4 sm:$0xff]   ;;  %v5617_v63 = vld [vmem:[#allocation10 + $0x5f4] ss:$28 sps:$4 sm:$0xff]  }
  0xb6   :  { %3276 = vmatprep.subr.bf16.mxu1 %v5557_v23  ;;  %v5609_v61 = vld [vmem:[#allocation10 + $0x5b8] ss:$28 sps:$4 sm:$0xff]   ;;  %v5612_v1 = vld [vmem:[#allocation10 + $0x268] ss:$28 sps:$4 sm:$0xff]   ;;  %v5615_v2 = vld [vmem:[#allocation10 + $0x5f0] ss:$28 sps:$4 sm:$0xff]  }
  0xb7   :  { %v5620_v3 = vld [vmem:[#allocation10 + $0x2a4] ss:$28 sps:$4 sm:$0xff]   ;;  %v5623_v4 = vld [vmem:[#allocation10 + $0x62c] ss:$28 sps:$4 sm:$0xff]   ;;  %v5626_v7 = vld [vmem:[#allocation10 + $0x2dc] ss:$28 sps:$4 sm:$0xff]  }
  0xb8   :  { %3072 = vmatpush1.bf16.msra.mxu0 %v5552_v24  ;;  %v5618_v5 = vld [vmem:[#allocation10 + $0x2a0] ss:$28 sps:$4 sm:$0xff]   ;;  %v5621_v6 = vld [vmem:[#allocation10 + $0x628] ss:$28 sps:$4 sm:$0xff]   ;;  %v5624_v9 = vld [vmem:[#allocation10 + $0x2d8] ss:$28 sps:$4 sm:$0xff]  }
  0xb9   :  { %3277 = vmatpush1.bf16.msra.mxu1 %v5555_v25  ;;  %3073 = vmatprep.subr.bf16.mxu0 %v5560_v26  ;;  %v5629_v8 = vld [vmem:[#allocation10 + $0x664] ss:$28 sps:$4 sm:$0xff]   ;;  %v5632_v11 = vld [vmem:[#allocation10 + $0x314] ss:$28 sps:$4 sm:$0xff]   ;;  %v5635_v12 = vld [vmem:[#allocation10 + $0x69c] ss:$28 sps:$4 sm:$0xff]  }
  0xba   :  { %3278 = vmatprep.subr.bf16.mxu1 %v5563_v27  ;;  %v5627_v10 = vld [vmem:[#allocation10 + $0x660] ss:$28 sps:$4 sm:$0xff]   ;;  %v5630_v13 = vld [vmem:[#allocation10 + $0x310] ss:$28 sps:$4 sm:$0xff]   ;;  %v5633_v14 = vld [vmem:[#allocation10 + $0x698] ss:$28 sps:$4 sm:$0xff]  }
  0xbb   :  { %v5636_v15 = vld [vmem:[#allocation10 + $0x348] ss:$28 sps:$4 sm:$0xff]   ;;  %v5639_v18 = vld [vmem:[#allocation10 + $0x6d0] ss:$28 sps:$4 sm:$0xff]   ;;  %s4838_s2 = sshll.u32 %s6558_s8, 4  ;;  %s4839_s2 = int_to_ptr.vmem [resolvable:$true] %s4838_s2 }
  0xbc   :  { %3074 = vmatpush1.bf16.msra.mxu0 %v5558_v28  ;;  %v5638_v17 = vld [vmem:[#allocation10 + $0x34c] ss:$28 sps:$4 sm:$0xff]   ;;  %v5641_v19 = vld [vmem:[#allocation10 + $0x6d4] ss:$28 sps:$4 sm:$0xff]   ;;  %v5644_v20 = vld [vmem:[#allocation10 + $0x384] ss:$28 sps:$4 sm:$0xff]   ;;  %p6513_p3 = scmp.lt.s32.totalorder %s4839_s2, %s4839_s2 }
  0xbd   :  { %3279 = vmatpush1.bf16.msra.mxu1 %v5561_v29  ;;  %3075 = vmatprep.subr.bf16.mxu0 %v5566_v30  ;;  %v5647_v21 = vld [vmem:[#allocation10 + $0x70c] ss:$28 sps:$4 sm:$0xff]   ;;  %s6508_s20 = scalar_lea.vmem %s4839_s2, 256 }
  0xbe   :  { %3280 = vmatprep.subr.bf16.mxu1 %v5569_v31  ;;  %p6509_p2 = scmp.ne.s32.totalorder %s4839_s2, %s6508_s20  ;;  %p6514_p4 = scmp.lt.s32.totalorder %s6508_s20, %s6508_s20 }
  0xc0   :  { %3076 = vmatpush1.bf16.msra.mxu0 %v5564_v32  ;;  %p6515_p5 = por %p6514_p4, %p6513_p3 }
  0xc1   :  { %3281 = vmatpush1.bf16.msra.mxu1 %v5567_v33  ;;  %3077 = vmatprep.subr.bf16.mxu0 %v5572_v34 }
  0xc2   :  { %3282 = vmatprep.subr.bf16.mxu1 %v5575_v35  ;;  %p6516_p6 = pnand %p6515_p5, %p6509_p2 }
  0xc4   :  { %3078 = vmatpush1.bf16.msra.mxu0 %v5570_v36 }
  0xc5   :  { %3283 = vmatpush1.bf16.msra.mxu1 %v5573_v37  ;;  %3079 = vmatprep.subr.bf16.mxu0 %v5578_v38 }
  0xc6   :  { %3284 = vmatprep.subr.bf16.mxu1 %v5581_v39 }
  0xc8   :  { %3080 = vmatpush1.bf16.msra.mxu0 %v5576_v40 }
  0xc9   :  { %3285 = vmatpush1.bf16.msra.mxu1 %v5579_v41  ;;  %3081 = vmatprep.subr.bf16.mxu0 %v5584_v42 }
  0xca   :  { %3286 = vmatprep.subr.bf16.mxu1 %v5587_v43 }
  0xcc   :  { %3082 = vmatpush1.bf16.msra.mxu0 %v5582_v44 }
  0xcd   :  { %3287 = vmatpush1.bf16.msra.mxu1 %v5585_v45  ;;  %3083 = vmatprep.subr.bf16.mxu0 %v5590_v46 }
  0xce   :  { %3288 = vmatprep.subr.bf16.mxu1 %v5593_v47 }
  0xd0   :  { %3084 = vmatpush1.bf16.msra.mxu0 %v5588_v48 }
  0xd1   :  { %3289 = vmatpush1.bf16.msra.mxu1 %v5591_v49  ;;  %3085 = vmatprep.subr.bf16.mxu0 %v5596_v50 }
  0xd2   :  { %3290 = vmatprep.subr.bf16.mxu1 %v5599_v51 }
  0xd4   :  { %3086 = vmatpush1.bf16.msra.mxu0 %v5594_v52 }
  0xd5   :  { %3291 = vmatpush1.bf16.msra.mxu1 %v5597_v53  ;;  %3087 = vmatprep.subr.bf16.mxu0 %v5602_v54 }
  0xd6   :  { %3292 = vmatprep.subr.bf16.mxu1 %v5605_v55 }
  0xd8   :  { %3088 = vmatpush1.bf16.msra.mxu0 %v5600_v56 }
  0xd9   :  { %3293 = vmatpush1.bf16.msra.mxu1 %v5603_v57  ;;  %3089 = vmatprep.subr.bf16.mxu0 %v5608_v58 }
  0xda   :  { %3294 = vmatprep.subr.bf16.mxu1 %v5611_v59 }
  0xdc   :  { %3090 = vmatpush1.bf16.msra.mxu0 %v5606_v60 }
  0xdd   :  { %3295 = vmatpush1.bf16.msra.mxu1 %v5609_v61  ;;  %3091 = vmatprep.subr.bf16.mxu0 %v5614_v62 }
  0xde   :  { %3296 = vmatprep.subr.bf16.mxu1 %v5617_v63 }
  0xe0   :  { %3092 = vmatpush1.bf16.msra.mxu0 %v5612_v1 }
  0xe1   :  { %3297 = vmatpush1.bf16.msra.mxu1 %v5615_v2  ;;  %3093 = vmatprep.subr.bf16.mxu0 %v5620_v3 }
  0xe2   :  { %3298 = vmatprep.subr.bf16.mxu1 %v5623_v4 }
  0xe4   :  { %3094 = vmatpush1.bf16.msra.mxu0 %v5618_v5 }
  0xe5   :  { %3299 = vmatpush1.bf16.msra.mxu1 %v5621_v6  ;;  %3095 = vmatprep.subr.bf16.mxu0 %v5626_v7 }
  0xe6   :  { %3300 = vmatprep.subr.bf16.mxu1 %v5629_v8 }
  0xe8   :  { %3096 = vmatpush1.bf16.msra.mxu0 %v5624_v9 }
  0xe9   :  { %3301 = vmatpush1.bf16.msra.mxu1 %v5627_v10  ;;  %3097 = vmatprep.subr.bf16.mxu0 %v5632_v11 }
  0xea   :  { %3302 = vmatprep.subr.bf16.mxu1 %v5635_v12 }
  0xec   :  { %3098 = vmatpush1.bf16.msra.mxu0 %v5630_v13 }
  0xed   :  { %3303 = vmatpush1.bf16.msra.mxu1 %v5633_v14  ;;  %3099 = vmatprep.subr.bf16.mxu0 %v5638_v17 }
  0xee   :  { %3304 = vmatprep.subr.bf16.mxu1 %v5641_v19 }
  0xf0   :  { %3100 = vmatpush1.bf16.msra.mxu0 %v5636_v15 }
  0xf1   :  { %3305 = vmatpush1.bf16.msra.mxu1 %v5639_v18  ;;  %3110 = vmatprep.subr.bf16.mxu0 %v5644_v20 }
  0xf2   :  { %3315 = vmatprep.subr.bf16.mxu1 %v5647_v21 }
 0x17e   :  { %v6741_v22 = vpop.f32.mrb[0].mxu0 }
 0x17f   :  { %v6743_v23 = vpop.f32.mrb[0].mxu1  ;;  %v357_v24 = vrot.slane %v6741_v22, 4  ;;  %v407_v25 = vmul.f32 %v6741_v22, %v6741_v22  ;;  %v6751_v28 = vpop.f32.mrb[1].mxu0 }
 0x180   :  { %v369_v26 = vrot.slane %v6743_v23, 4  ;;  %v409_v27 = vmul.f32 %v6743_v23, %v6743_v23  ;;  %v6753_v29 = vpop.f32.mrb[1].mxu1  ;;  %v363_v30 = vrot.slane %v6751_v28, 4  ;;  %v408_v31 = vmul.f32 %v6751_v28, %v6751_v28  ;;  %v230_v34 = vpop.f32.mrb[2].mxu0 }
 0x181   :  { %v375_v32 = vrot.slane %v6753_v29, 4  ;;  %v410_v33 = vmul.f32 %v6753_v29, %v6753_v29  ;;  %v271_v35 = vpop.f32.mrb[2].mxu1  ;;  %v358_v36 = vadd.f32 %v357_v24, %v6741_v22  ;;  %v414_v37 = vrot.slane %v407_v25, 4  ;;  %v231_v40 = vpop.f32.mrb[3].mxu0 }
 0x182   :  { %v370_v38 = vadd.f32 %v369_v26, %v6743_v23  ;;  %v426_v39 = vrot.slane %v409_v27, 4  ;;  %v272_v41 = vpop.f32.mrb[3].mxu1  ;;  %v364_v42 = vadd.f32 %v363_v30, %v6751_v28  ;;  %v420_v43 = vrot.slane %v408_v31, 4 }
 0x183   :  { %v376_v44 = vadd.f32 %v375_v32, %v6753_v29  ;;  %v432_v45 = vrot.slane %v410_v33, 4  ;;  %v359_v46 = vrot.slane %v358_v36, 2  ;;  %v415_v47 = vadd.f32 %v414_v37, %v407_v25 }
 0x184   :  { %v371_v48 = vrot.slane %v370_v38, 2  ;;  %v427_v49 = vadd.f32 %v426_v39, %v409_v27  ;;  %v365_v50 = vrot.slane %v364_v42, 2  ;;  %v421_v51 = vadd.f32 %v420_v43, %v408_v31 }
 0x185   :  { %v377_v52 = vrot.slane %v376_v44, 2  ;;  %v433_v53 = vadd.f32 %v432_v45, %v410_v33  ;;  %v360_v54 = vadd.f32 %v359_v46, %v358_v36  ;;  %v416_v55 = vrot.slane %v415_v47, 2 }
 0x186   :  { %v372_v56 = vadd.f32 %v371_v48, %v370_v38  ;;  %v428_v57 = vrot.slane %v427_v49, 2  ;;  %v366_v58 = vadd.f32 %v365_v50, %v364_v42  ;;  %v422_v59 = vrot.slane %v421_v51, 2  ;;  %v6765_v62 = vpop.f32.mrb[4].mxu0 }
 0x187   :  { %v378_v60 = vadd.f32 %v377_v52, %v376_v44  ;;  %v434_v61 = vrot.slane %v433_v53, 2  ;;  %v6767_v63 = vpop.f32.mrb[4].mxu1  ;;  %v361_v1 = vrot.slane %v360_v54, 1  ;;  %v417_v2 = vadd.f32 %v416_v55, %v415_v47  ;;  %v6769_v5 = vpop.f32.mrb[5].mxu0 }
 0x188   :  { %v373_v3 = vrot.slane %v372_v56, 1  ;;  %v429_v4 = vadd.f32 %v428_v57, %v427_v49  ;;  %v5452_v6 = vpop.f32.mrb[5].mxu1  ;;  %v367_v7 = vrot.slane %v366_v58, 1  ;;  %v423_v8 = vadd.f32 %v422_v59, %v421_v51  ;;  %v312_v11 = vpop.f32.mrb[6].mxu0 }
 0x189   :  { %v379_v9 = vrot.slane %v378_v60, 1  ;;  %v435_v10 = vadd.f32 %v434_v61, %v433_v53  ;;  %v352_v12 = vpop.f32.mrb[6].mxu1  ;;  %v362_v13 = vadd.f32 %v361_v1, %v360_v54  ;;  %v418_v14 = vrot.slane %v417_v2, 1  ;;  %v313_v18 = vpop.f32.mrb[7].mxu0 }
 0x18a   :  { %v374_v15 = vadd.f32 %v373_v3, %v372_v56  ;;  %v430_v17 = vrot.slane %v429_v4, 1  ;;  %v5453_v19 = vpop.f32.mrb[7].mxu1  ;;  %v368_v20 = vadd.f32 %v367_v7, %v366_v58  ;;  %v424_v21 = vrot.slane %v423_v8, 1 }
 0x18b   :  { %v380_v24 = vadd.f32 %v379_v9, %v378_v60  ;;  %v436_v25 = vrot.slane %v435_v10, 1  ;;  %v400_v26 = vmul.f32 0.125, %v362_v13  ;;  %v419_v27 = vadd.f32 %v418_v14, %v417_v2  ;;  %v6788_v2 = vld [vmem:[#allocation7] sm:$0xff] }
 0x18c   :  { %v402_v30 = vmul.f32 0.125, %v374_v15  ;;  %v431_v31 = vadd.f32 %v430_v17, %v429_v4  ;;  %v6771_v32 = vmul.f32 0.125, %v368_v20  ;;  %v425_v33 = vadd.f32 %v424_v21, %v423_v8 }
 0x18d   :  { %v6773_v34 = vmul.f32 0.125, %v380_v24  ;;  %v437_v35 = vadd.f32 %v436_v25, %v435_v10  ;;  %v456_v36 = vmul.f32 0.125, %v419_v27  ;;  %v463_v37 = vmul.f32 %v400_v26, %v400_v26  ;;  %v6800_v10 = vld [vmem:[#allocation8] sm:$0xff] }
 0x18e   :  { %v458_v38 = vmul.f32 0.125, %v431_v31  ;;  %v465_v39 = vmul.f32 %v402_v30, %v402_v30  ;;  %v457_v40 = vmul.f32 0.125, %v425_v33  ;;  %v464_v41 = vmul.f32 %v6771_v32, %v6771_v32 }
 0x18f   :  { %v470_v42 = vsub.f32 %v456_v36, %v463_v37  ;;  %v459_v43 = vmul.f32 0.125, %v437_v35  ;;  %v466_v44 = vmul.f32 %v6773_v34, %v6773_v34  ;;  %v506_v45 = vlaneseq }
 0x190   :  { %v472_v46 = vsub.f32 %v458_v38, %v465_v39  ;;  %v471_v47 = vsub.f32 %v457_v40, %v464_v41  ;;  %v387_v50 = vrot.slane %v6769_v5, 4  ;;  %v412_v53 = vmul.f32 %v6769_v5, %v6769_v5 }
 0x191   :  { %v484_v48 = vadd.f32 1e-05, %v470_v42  ;;  %v473_v49 = vsub.f32 %v459_v43, %v466_v44  ;;  %v6783_v56 = vshrl.u32 %v506_v45, 7  ;;  %v479_v8 = vsub.f32 %v6743_v23, %v402_v30 }
 0x192   :  { %v486_v51 = vadd.f32 1e-05, %v472_v46  ;;  %v485_v52 = vadd.f32 1e-05, %v471_v47  ;;  %v388_v55 = vadd.f32 %v387_v50, %v6769_v5  ;;  %v444_v57 = vrot.slane %v412_v53, 4 }
 0x193   :  { %6274 = vrsqrt.f32 %v484_v48  ;;  %v487_v54 = vadd.f32 1e-05, %v473_v49  ;;  %v6786_v61 = vsub.s32 0, %v6783_v56  ;;  %v6791_v3 = vsub.s32 2, %v6783_v56 }
 0x194   :  { %6276 = vrsqrt.f32 %v486_v51  ;;  %v389_v58 = vrot.slane %v388_v55, 2  ;;  %v445_v59 = vadd.f32 %v444_v57, %v412_v53  ;;  %v6794_v4 = vsub.s32 1, %v6783_v56 }
 0x195   :  { %6278 = vrsqrt.f32 %v485_v52  ;;  %v6798_v9 = vsub.s32 3, %v6783_v56  ;;  %v477_v12 = vsub.f32 %v6741_v22, %v400_v26  ;;  %v509_v13 = vrot.slane %v6788_v2, %v6786_v61  ;;  %v5642_v52 = vld [vmem:[#allocation10 + $0x380] ss:$28 sps:$4 sm:$0xff]  }
 0x196   :  { %6280 = vrsqrt.f32 %v487_v54  ;;  %v390_v60 = vadd.f32 %v389_v58, %v388_v55  ;;  %v446_v1 = vrot.slane %v445_v59, 2  ;;  %v517_v17 = vrot.slane %v6788_v2, %v6791_v3 }
 0x197   :  { %v513_v18 = vrot.slane %v6788_v2, %v6794_v4  ;;  %v480_v23 = vsub.f32 %v6753_v29, %v6773_v34  ;;  %v478_v22 = vsub.f32 %v6751_v28, %v6771_v32  ;;  %v552_v24 = vrot.slane %v6800_v10, %v6786_v61 }
 0x198   :  { %v391_v6 = vrot.slane %v390_v60, 1  ;;  %v447_v7 = vadd.f32 %v446_v1, %v445_v59  ;;  %v521_v30 = vrot.slane %v6788_v2, %v6798_v9  ;;  %v560_v31 = vrot.slane %v6800_v10, %v6791_v3 }
 0x199   :  { %v556_v28 = vrot.slane %v6800_v10, %v6794_v4  ;;  %v564_v38 = vrot.slane %v6800_v10, %v6798_v9  ;;  %v381_v44 = vrot.slane %v6765_v62, 4  ;;  %v411_v45 = vmul.f32 %v6765_v62, %v6765_v62 }
 0x19a   :  { %v392_v11 = vadd.f32 %v391_v6, %v390_v60  ;;  %v448_v14 = vrot.slane %v447_v7, 1  ;;  %v5645_v60 = vld [vmem:[#allocation10 + $0x708] ss:$28 sps:$4 sm:$0xff]   ;;  %v5650_v6 = vld [vmem:[#allocation10 + $0x3bc] ss:$28 sps:$4 sm:$0xff]  }
 0x19b   :  { %v382_v54 = vadd.f32 %v381_v44, %v6765_v62  ;;  %v438_v55 = vrot.slane %v411_v45, 4 }
 0x19c   :  { %v6811_v19 = vmul.f32 0.125, %v392_v11  ;;  %v449_v25 = vadd.f32 %v448_v14, %v447_v7  ;;  %v5653_v7 = vld [vmem:[#allocation10 + $0x744] ss:$28 sps:$4 sm:$0xff]  }
 0x19d   :  { %v6275_v15 = vpop.eup %6274  ;;  %v439_v11 = vadd.f32 %v438_v55, %v411_v45  ;;  %v5651_v14 = vld [vmem:[#allocation10 + $0x740] ss:$28 sps:$4 sm:$0xff]   ;;  %v5689_v55 = vld [vmem:[#allocation10 + $0x894] ss:$28 sps:$4 sm:$0xff]  }
 0x19e   :  { %v6277_v20 = vpop.eup %6276  ;;  %v498_v21 = vmul.f32 %v6275_v15, %v477_v12  ;;  %v468_v29 = vmul.f32 %v6811_v19, %v6811_v19  ;;  %v461_v32 = vmul.f32 0.125, %v449_v25  ;;  %v6843_v12 = vsub.s32 5, %v6783_v56  ;;  %v5656_v15 = vld [vmem:[#allocation10 + $0x3f4] ss:$28 sps:$4 sm:$0xff]  }
 0x19f   :  { %v6279_v26 = vpop.eup %6278  ;;  %v500_v27 = vmul.f32 %v6277_v20, %v479_v8  ;;  %v383_v8 = vrot.slane %v382_v54, 2  ;;  %v440_v20 = vrot.slane %v439_v11, 2  ;;  %v5657_v25 = vld [vmem:[#allocation10 + $0x778] ss:$28 sps:$4 sm:$0xff]  }
 0x1a0   :  { %v6281_v33 = vpop.eup %6280  ;;  %v541_v34 = vmul.f32 %v509_v13, %v498_v21  ;;  %v499_v35 = vmul.f32 %v6279_v26, %v478_v22  ;;  %v475_v41 = vsub.f32 %v461_v32, %v468_v29  ;;  %v5648_v13 = vld [vmem:[#allocation10 + $0x3b8] ss:$28 sps:$4 sm:$0xff]   ;;  %v529_v21 = vrot.slane %v6788_v2, %v6843_v12  ;;  %v5662_v26 = vld [vmem:[#allocation10 + $0x42c] ss:$28 sps:$4 sm:$0xff]  }
 0x1a1   :  { %v543_v36 = vmul.f32 %v517_v17, %v500_v27  ;;  %v501_v37 = vmul.f32 %v6281_v33, %v480_v23  ;;  %v482_v17 = vsub.f32 %v6769_v5, %v6811_v19  ;;  %v384_v23 = vadd.f32 %v383_v8, %v382_v54  ;;  %v5665_v19 = vld [vmem:[#allocation10 + $0x7b4] ss:$28 sps:$4 sm:$0xff]   ;;  %v5660_v33 = vld [vmem:[#allocation10 + $0x428] ss:$28 sps:$4 sm:$0xff]  }
 0x1a2   :  { %v542_v39 = vmul.f32 %v513_v18, %v499_v35  ;;  %v584_v40 = vadd.f32 %v552_v24, %v541_v34  ;;  %v489_v47 = vadd.f32 1e-05, %v475_v41  ;;  %v5659_v18 = vld [vmem:[#allocation10 + $0x77c] ss:$28 sps:$4 sm:$0xff]   ;;  %v5654_v24 = vld [vmem:[#allocation10 + $0x3f0] ss:$28 sps:$4 sm:$0xff]   ;;  %v572_v5 = vrot.slane %v6800_v10, %v6843_v12 }
 0x1a3   :  { %v544_v42 = vmul.f32 %v521_v30, %v501_v37  ;;  %v586_v43 = vadd.f32 %v560_v31, %v543_v36  ;;  %v385_v30 = vrot.slane %v384_v23, 1  ;;  %v441_v31 = vadd.f32 %v440_v20, %v439_v11  ;;  %v5663_v34 = vld [vmem:[#allocation10 + $0x7b0] ss:$28 sps:$4 sm:$0xff]   ;;  %v5668_v35 = vld [vmem:[#allocation10 + $0x464] ss:$28 sps:$4 sm:$0xff]  }
 0x1a4   :  { %v585_v46 = vadd.f32 %v556_v28, %v542_v39  ;;  %v591_v49 = vmax.f32 %v584_v40, 0.0  ;;  %6282 = vrsqrt.f32 %v489_v47  ;;  %v5671_v32 = vld [vmem:[#allocation10 + $0x7ec] ss:$28 sps:$4 sm:$0xff]   ;;  %v5666_v39 = vld [vmem:[#allocation10 + $0x460] ss:$28 sps:$4 sm:$0xff]  }
 0x1a5   :  { %v587_v48 = vadd.f32 %v564_v38, %v544_v42  ;;  %v593_v50 = vmax.f32 %v586_v43, 0.0  ;;  %v386_v36 = vadd.f32 %v385_v30, %v384_v23  ;;  %v442_v37 = vrot.slane %v441_v31, 1  ;;  %v5669_v40 = vld [vmem:[#allocation10 + $0x7e8] ss:$28 sps:$4 sm:$0xff]   ;;  %v5674_v41 = vld [vmem:[#allocation10 + $0x49c] ss:$28 sps:$4 sm:$0xff]  }
 0x1a6   :  { %v592_v51 = vmax.f32 %v585_v46, 0.0  ;;  %v6837_v1 = vpack.c.bf16 %v591_v49, %v591_v49  ;;  %v5677_v43 = vld [vmem:[#allocation10 + $0x824] ss:$28 sps:$4 sm:$0xff]   ;;  %v5672_v46 = vld [vmem:[#allocation10 + $0x498] ss:$28 sps:$4 sm:$0xff]  }
 0x1a7   :  { %v594_v53 = vmax.f32 %v587_v48, 0.0  ;;  %v6833_v58 = vpack.c.bf16 %v593_v50, %v593_v50  ;;  %v6855_v44 = vmul.f32 0.125, %v386_v36  ;;  %v443_v45 = vadd.f32 %v442_v37, %v441_v31  ;;  %v5675_v47 = vld [vmem:[#allocation10 + $0x820] ss:$28 sps:$4 sm:$0xff]   ;;  %v5680_v48 = vld [vmem:[#allocation10 + $0x4d4] ss:$28 sps:$4 sm:$0xff]  }
 0x1a8   :  { %v6831_v57 = vpack.c.bf16 %v592_v51, %v592_v51  ;;  %v5683_v49 = vld [vmem:[#allocation10 + $0x85c] ss:$28 sps:$4 sm:$0xff]   ;;  %v5686_v54 = vld [vmem:[#allocation10 + $0x50c] ss:$28 sps:$4 sm:$0xff]   ;;  %v6867_v37 = vsub.s32 4, %v6783_v56 }
 0x1a9   :  { %v6835_v59 = vpack.c.bf16 %v594_v53, %v594_v53  ;;  %v460_v50 = vmul.f32 0.125, %v443_v45  ;;  %v467_v51 = vmul.f32 %v6855_v44, %v6855_v44  ;;  %v5681_v53 = vld [vmem:[#allocation10 + $0x858] ss:$28 sps:$4 sm:$0xff]   ;;  %v5684_v8 = vld [vmem:[#allocation10 + $0x508] ss:$28 sps:$4 sm:$0xff]   ;;  %v481_v36 = vsub.f32 %v6765_v62, %v6855_v44 }
 0x1aa   :  { %3101 = vmatprep.mubr.bf16.mxu0 %v6831_v57  ;;  %v5687_v11 = vld [vmem:[#allocation10 + $0x890] ss:$28 sps:$4 sm:$0xff]   ;;  %v5690_v23 = vld [vmem:[#allocation10 + $0x540] ss:$28 sps:$4 sm:$0xff]   ;;  %v5693_v20 = vld [vmem:[#allocation10 + $0x8c8] ss:$28 sps:$4 sm:$0xff]  }
 0x1ab   :  { %3306 = vmatprep.mubr.bf16.mxu1 %v6835_v59  ;;  %3102 = vmatmul.mubr.bf16.vlgmr.msra.gmra.mrb[8].mxu0 %v6837_v1  ;;  %v5714_v62 = vld [vmem:[#allocation10 + $0x620] ss:$28 sps:$4 sm:$0xff]   ;;  %v5717_v44 = vld [vmem:[#allocation10 + $0x9a8] ss:$28 sps:$4 sm:$0xff]  }
 0x1ac   :  { %3111 = vmatpush1.bf16.msra.mxu0 %v5642_v52  ;;  %3307 = vmatmul.mubr.bf16.vlgmr.msra.gmra.mrb[8].mxu1 %v6833_v58  ;;  %v5678_v52 = vld [vmem:[#allocation10 + $0x4d0] ss:$28 sps:$4 sm:$0xff]  }
 0x1ad   :  { %3316 = vmatpush1.bf16.msra.mxu1 %v5645_v60  ;;  %3112 = vmatprep.subr.bf16.mxu0 %v5650_v6  ;;  %v474_v60 = vsub.f32 %v460_v50, %v467_v51  ;;  %v393_v6 = vrot.slane %v6767_v63, 4  ;;  %v5725_v50 = vld [vmem:[#allocation10 + $0x9e4] ss:$28 sps:$4 sm:$0xff]  }
 0x1ae   :  { %3317 = vmatprep.subr.bf16.mxu1 %v5653_v7  ;;  %3142 = vmatprep.mubr.bf16.mxu0 %v6835_v59  ;;  %v6283_v22 = vpop.eup %6282  ;;  %v413_v7 = vmul.f32 %v6767_v63, %v6767_v63 }
 0x1af   :  { %v503_v27 = vmul.f32 %v6283_v22, %v482_v17  ;;  %v394_v17 = vadd.f32 %v393_v6, %v6767_v63  ;;  %v5701_v22 = vld [vmem:[#allocation10 + $0x904] ss:$28 sps:$4 sm:$0xff]   ;;  %v5728_v6 = vld [vmem:[#allocation10 + $0x694] ss:$28 sps:$4 sm:$0xff]  }
 0x1b0   :  { %3113 = vmatpush1.bf16.msra.mxu0 %v5648_v13  ;;  %v5692_v13 = vld [vmem:[#allocation10 + $0x544] ss:$28 sps:$4 sm:$0xff]  }
 0x1b1   :  { %3318 = vmatpush1.bf16.msra.mxu1 %v5651_v14  ;;  %3114 = vmatprep.subr.bf16.mxu0 %v5656_v15  ;;  %v546_v29 = vmul.f32 %v529_v21, %v503_v27  ;;  %v5695_v14 = vld [vmem:[#allocation10 + $0x8cc] ss:$28 sps:$4 sm:$0xff]   ;;  %v488_v15 = vadd.f32 1e-05, %v474_v60  ;;  %v5698_v21 = vld [vmem:[#allocation10 + $0x57c] ss:$28 sps:$4 sm:$0xff]  }
 0x1b2   :  { %3319 = vmatprep.subr.bf16.mxu1 %v5659_v18  ;;  %v450_v18 = vrot.slane %v413_v7, 4  ;;  %v5699_v27 = vld [vmem:[#allocation10 + $0x900] ss:$28 sps:$4 sm:$0xff]  }
 0x1b3   :  { %v589_v28 = vadd.f32 %v572_v5, %v546_v29  ;;  %6284 = vrsqrt.f32 %v488_v15  ;;  %v5704_v5 = vld [vmem:[#allocation10 + $0x5b4] ss:$28 sps:$4 sm:$0xff]   ;;  %v5723_v60 = vld [vmem:[#allocation10 + $0x9e0] ss:$28 sps:$4 sm:$0xff]  }
 0x1b4   :  { %3115 = vmatpush1.bf16.msra.mxu0 %v5654_v24  ;;  %v395_v24 = vrot.slane %v394_v17, 2  ;;  %v5702_v29 = vld [vmem:[#allocation10 + $0x5b0] ss:$28 sps:$4 sm:$0xff]   ;;  %v5729_v15 = vld [vmem:[#allocation10 + $0xa18] ss:$28 sps:$4 sm:$0xff]  }
 0x1b5   :  { %3320 = vmatpush1.bf16.msra.mxu1 %v5657_v25  ;;  %3116 = vmatprep.subr.bf16.mxu0 %v5662_v26  ;;  %v596_v38 = vmax.f32 %v589_v28, 0.0  ;;  %v451_v25 = vadd.f32 %v450_v18, %v413_v7  ;;  %v5696_v26 = vld [vmem:[#allocation10 + $0x578] ss:$28 sps:$4 sm:$0xff]  }
 0x1b6   :  { %3321 = vmatprep.subr.bf16.mxu1 %v5665_v19  ;;  %v5707_v19 = vld [vmem:[#allocation10 + $0x93c] ss:$28 sps:$4 sm:$0xff]   ;;  %v396_v30 = vadd.f32 %v395_v24, %v394_v17  ;;  %v5734_v17 = vld [vmem:[#allocation10 + $0x6cc] ss:$28 sps:$4 sm:$0xff]   ;;  %v5737_v18 = vld [vmem:[#allocation10 + $0xa54] ss:$28 sps:$4 sm:$0xff]  }
 0x1b7   :  { %v6853_v42 = vpack.c.bf16 %v596_v38, %v596_v38  ;;  %v452_v31 = vrot.slane %v451_v25, 2  ;;  %v5708_v38 = vld [vmem:[#allocation10 + $0x5e8] ss:$28 sps:$4 sm:$0xff]   ;;  %v5731_v7 = vld [vmem:[#allocation10 + $0xa1c] ss:$28 sps:$4 sm:$0xff]  }
 0x1b8   :  { %3117 = vmatpush1.bf16.msra.mxu0 %v5660_v33  ;;  %v5705_v33 = vld [vmem:[#allocation10 + $0x938] ss:$28 sps:$4 sm:$0xff]   ;;  %v397_v28 = vrot.slane %v396_v30, 1  ;;  %v5740_v24 = vld [vmem:[#allocation10 + $0x704] ss:$28 sps:$4 sm:$0xff]  }
 0x1b9   :  { %3322 = vmatpush1.bf16.msra.mxu1 %v5663_v34  ;;  %3118 = vmatprep.subr.bf16.mxu0 %v5668_v35  ;;  %v5710_v34 = vld [vmem:[#allocation10 + $0x5ec] ss:$28 sps:$4 sm:$0xff]   ;;  %v5713_v35 = vld [vmem:[#allocation10 + $0x974] ss:$28 sps:$4 sm:$0xff]  }
 0x1ba   :  { %3323 = vmatprep.subr.bf16.mxu1 %v5671_v32  ;;  %3347 = vmatprep.mubr.bf16.mxu1 %v6853_v42  ;;  %v453_v32 = vadd.f32 %v452_v31, %v451_v25  ;;  %v398_v45 = vadd.f32 %v397_v28, %v396_v30  ;;  %v5743_v25 = vld [vmem:[#allocation10 + $0xa8c] ss:$28 sps:$4 sm:$0xff]   ;;  %v5746_v30 = vld [vmem:[#allocation10 + $0x73c] ss:$28 sps:$4 sm:$0xff]   ;;  %v5749_v31 = vld [vmem:[#allocation10 + $0xac4] ss:$28 sps:$4 sm:$0xff]  }
 0x1bb   :  { %v5750_v28 = vld [vmem:[#allocation10 + $0x770] ss:$28 sps:$4 sm:$0xff]  }
 0x1bc   :  { %3119 = vmatpush1.bf16.msra.mxu0 %v5666_v39  ;;  %v6871_v51 = vmul.f32 0.125, %v398_v45  ;;  %v5759_v45 = vld [vmem:[#allocation10 + $0xb30] ss:$28 sps:$4 sm:$0xff]  }
 0x1bd   :  { %3324 = vmatpush1.bf16.msra.mxu1 %v5669_v40  ;;  %3120 = vmatprep.subr.bf16.mxu0 %v5674_v41  ;;  %v6285_v39 = vpop.eup %6284  ;;  %v5711_v40 = vld [vmem:[#allocation10 + $0x970] ss:$28 sps:$4 sm:$0xff]   ;;  %v5716_v41 = vld [vmem:[#allocation10 + $0x624] ss:$28 sps:$4 sm:$0xff]  }
 0x1be   :  { %3325 = vmatprep.subr.bf16.mxu1 %v5677_v43  ;;  %v5719_v43 = vld [vmem:[#allocation10 + $0x9ac] ss:$28 sps:$4 sm:$0xff]  }
 0x1c0   :  { %3121 = vmatpush1.bf16.msra.mxu0 %v5672_v46  ;;  %v454_v46 = vrot.slane %v453_v32, 1 }
 0x1c1   :  { %3326 = vmatpush1.bf16.msra.mxu1 %v5675_v47  ;;  %3122 = vmatprep.subr.bf16.mxu0 %v5680_v48  ;;  %v502_v47 = vmul.f32 %v6285_v39, %v481_v36  ;;  %v525_v48 = vrot.slane %v6788_v2, %v6867_v37  ;;  %v5758_v36 = vld [vmem:[#allocation10 + $0x7ac] ss:$28 sps:$4 sm:$0xff]   ;;  %v483_v39 = vsub.f32 %v6767_v63, %v6871_v51 }
 0x1c2   :  { %3327 = vmatprep.subr.bf16.mxu1 %v5683_v49  ;;  %v5722_v49 = vld [vmem:[#allocation10 + $0x65c] ss:$28 sps:$4 sm:$0xff]   ;;  %v5765_v63 = vld [vmem:[#allocation10 + $0xb68] ss:$28 sps:$4 sm:$0xff]  }
 0x1c4   :  { %3123 = vmatpush1.bf16.msra.mxu0 %v5678_v52  ;;  %v455_v52 = vadd.f32 %v454_v46, %v453_v32  ;;  %v5753_v32 = vld [vmem:[#allocation10 + $0xaf8] ss:$28 sps:$4 sm:$0xff]   ;;  %v5764_v46 = vld [vmem:[#allocation10 + $0x7e4] ss:$28 sps:$4 sm:$0xff]  }
 0x1c5   :  { %3328 = vmatpush1.bf16.msra.mxu1 %v5681_v53  ;;  %3124 = vmatprep.subr.bf16.mxu0 %v5686_v54  ;;  %v545_v53 = vmul.f32 %v525_v48, %v502_v47  ;;  %v5720_v54 = vld [vmem:[#allocation10 + $0x658] ss:$28 sps:$4 sm:$0xff]   ;;  %v5767_v47 = vld [vmem:[#allocation10 + $0xb6c] ss:$28 sps:$4 sm:$0xff]  }
 0x1c6   :  { %3329 = vmatprep.subr.bf16.mxu1 %v5689_v55  ;;  %v568_v55 = vrot.slane %v6800_v10, %v6867_v37 }
 0x1c8   :  { %3125 = vmatpush1.bf16.msra.mxu0 %v5684_v8  ;;  %v462_v8 = vmul.f32 0.125, %v455_v52 }
 0x1c9   :  { %3330 = vmatpush1.bf16.msra.mxu1 %v5687_v11  ;;  %3126 = vmatprep.subr.bf16.mxu0 %v5692_v13  ;;  %v469_v11 = vmul.f32 %v6871_v51, %v6871_v51  ;;  %v5726_v13 = vld [vmem:[#allocation10 + $0x690] ss:$28 sps:$4 sm:$0xff]   ;;  %v5768_v51 = vld [vmem:[#allocation10 + $0x818] ss:$28 sps:$4 sm:$0xff]  }
 0x1ca   :  { %3331 = vmatprep.subr.bf16.mxu1 %v5695_v14  ;;  %v588_v14 = vadd.f32 %v568_v55, %v545_v53  ;;  %v5771_v53 = vld [vmem:[#allocation10 + $0xba0] ss:$28 sps:$4 sm:$0xff]   ;;  %v5774_v55 = vld [vmem:[#allocation10 + $0x850] ss:$28 sps:$4 sm:$0xff]  }
 0x1cc   :  { %3127 = vmatpush1.bf16.msra.mxu0 %v5690_v23  ;;  %v476_v23 = vsub.f32 %v462_v8, %v469_v11  ;;  %v5785_v8 = vld [vmem:[#allocation10 + $0xc14] ss:$28 sps:$4 sm:$0xff]   ;;  %v5780_v11 = vld [vmem:[#allocation10 + $0x888] ss:$28 sps:$4 sm:$0xff]  }
 0x1cd   :  { %3332 = vmatpush1.bf16.msra.mxu1 %v5693_v20  ;;  %3128 = vmatprep.subr.bf16.mxu0 %v5698_v21  ;;  %v5732_v20 = vld [vmem:[#allocation10 + $0x6c8] ss:$28 sps:$4 sm:$0xff]   ;;  %v595_v21 = vmax.f32 %v588_v14, 0.0 }
 0x1ce   :  { %3333 = vmatprep.subr.bf16.mxu1 %v5701_v22  ;;  %v5735_v22 = vld [vmem:[#allocation10 + $0xa50] ss:$28 sps:$4 sm:$0xff]   ;;  %v5788_v14 = vld [vmem:[#allocation10 + $0x8c4] ss:$28 sps:$4 sm:$0xff]  }
 0x1d0   :  { %3129 = vmatpush1.bf16.msra.mxu0 %v5696_v26  ;;  %v490_v26 = vadd.f32 1e-05, %v476_v23  ;;  %v5790_v23 = vld [vmem:[#allocation10 + $0x18] ss:$28 sps:$4 sm:$0xff]  }
 0x1d1   :  { %3334 = vmatpush1.bf16.msra.mxu1 %v5699_v27  ;;  %3130 = vmatprep.subr.bf16.mxu0 %v5704_v5  ;;  %v5738_v27 = vld [vmem:[#allocation10 + $0x700] ss:$28 sps:$4 sm:$0xff]   ;;  %v6877_v5 = vpack.c.bf16 %v595_v21, %v595_v21  ;;  %v5794_v21 = vld [vmem:[#allocation10 + $0x210] ss:$28 sps:$4 sm:$0xff]  }
 0x1d2   :  { %3335 = vmatprep.subr.bf16.mxu1 %v5707_v19  ;;  %v5741_v19 = vld [vmem:[#allocation10 + $0xa88] ss:$28 sps:$4 sm:$0xff]   ;;  %6286 = vrsqrt.f32 %v490_v26 }
 0x1d3   :  { %v5799_v26 = vld [vmem:[#allocation10 + $0x248] ss:$28 sps:$4 sm:$0xff]  }
 0x1d4   :  { %3131 = vmatpush1.bf16.msra.mxu0 %v5702_v29  ;;  %v5744_v29 = vld [vmem:[#allocation10 + $0x738] ss:$28 sps:$4 sm:$0xff]  }
 0x1d5   :  { %3336 = vmatpush1.bf16.msra.mxu1 %v5705_v33  ;;  %3132 = vmatprep.subr.bf16.mxu0 %v5710_v34  ;;  %v5747_v33 = vld [vmem:[#allocation10 + $0xac0] ss:$28 sps:$4 sm:$0xff]   ;;  %v5752_v34 = vld [vmem:[#allocation10 + $0x774] ss:$28 sps:$4 sm:$0xff]  }
 0x1d6   :  { %3337 = vmatprep.subr.bf16.mxu1 %v5713_v35  ;;  %v5755_v35 = vld [vmem:[#allocation10 + $0xafc] ss:$28 sps:$4 sm:$0xff]  }
 0x1d8   :  { %3133 = vmatpush1.bf16.msra.mxu0 %v5708_v38  ;;  %v5761_v38 = vld [vmem:[#allocation10 + $0xb34] ss:$28 sps:$4 sm:$0xff]  }
 0x1d9   :  { %3338 = vmatpush1.bf16.msra.mxu1 %v5711_v40  ;;  %3134 = vmatprep.subr.bf16.mxu0 %v5716_v41  ;;  %v6886_v40 = vsub.s32 6, %v6783_v56  ;;  %v5756_v41 = vld [vmem:[#allocation10 + $0x7a8] ss:$28 sps:$4 sm:$0xff]   ;;  %v5770_v56 = vld [vmem:[#allocation10 + $0x81c] ss:$28 sps:$4 sm:$0xff]  }
 0x1da   :  { %3339 = vmatprep.subr.bf16.mxu1 %v5719_v43 }
 0x1db   :  { %v576_v52 = vrot.slane %v6800_v10, %v6886_v40  ;;  %v5783_v10 = vld [vmem:[#allocation10 + $0xc10] ss:$28 sps:$4 sm:$0xff]  }
 0x1dc   :  { %3135 = vmatpush1.bf16.msra.mxu0 %v5714_v62  ;;  %v6287_v43 = vpop.eup %6286  ;;  %v533_v62 = vrot.slane %v6788_v2, %v6886_v40  ;;  %v5779_v2 = vld [vmem:[#allocation10 + $0xbdc] ss:$28 sps:$4 sm:$0xff]  }
 0x1dd   :  { %3340 = vmatpush1.bf16.msra.mxu1 %v5717_v44  ;;  %3136 = vmatprep.subr.bf16.mxu0 %v5722_v49  ;;  %v504_v48 = vmul.f32 %v6287_v43, %v483_v39  ;;  %v5762_v44 = vld [vmem:[#allocation10 + $0x7e0] ss:$28 sps:$4 sm:$0xff]   ;;  %v5811_v39 = vld [vmem:[#allocation10 + $0x9d8] ss:$28 sps:$4 sm:$0xff]  }
 0x1de   :  { %3341 = vmatprep.subr.bf16.mxu1 %v5725_v50  ;;  %v5773_v49 = vld [vmem:[#allocation10 + $0xba4] ss:$28 sps:$4 sm:$0xff]   ;;  %v5818_v43 = vld [vmem:[#allocation10 + $0xa14] ss:$28 sps:$4 sm:$0xff]  }
 0x1df   :  { %v547_v50 = vmul.f32 %v533_v62, %v504_v48  ;;  %v5823_v48 = vld [vmem:[#allocation10 + $0xa4c] ss:$28 sps:$4 sm:$0xff]   ;;  %v5824_v62 = vld [vmem:[#allocation10 + $0x360] ss:$28 sps:$4 sm:$0xff]  }
 0x1e0   :  { %3137 = vmatpush1.bf16.msra.mxu0 %v5720_v54  ;;  %v5776_v54 = vld [vmem:[#allocation10 + $0x854] ss:$28 sps:$4 sm:$0xff]  }
 0x1e1   :  { %3342 = vmatpush1.bf16.msra.mxu1 %v5723_v60  ;;  %3138 = vmatprep.subr.bf16.mxu0 %v5728_v6  ;;  %v590_v60 = vadd.f32 %v576_v52, %v547_v50  ;;  %v5777_v6 = vld [vmem:[#allocation10 + $0xbd8] ss:$28 sps:$4 sm:$0xff]   ;;  %v5826_v50 = vld [vmem:[#allocation10 + $0xa80] ss:$28 sps:$4 sm:$0xff]  }
 0x1e2   :  { %3343 = vmatprep.subr.bf16.mxu1 %v5731_v7  ;;  %v5782_v7 = vld [vmem:[#allocation10 + $0x88c] ss:$28 sps:$4 sm:$0xff]   ;;  %v5833_v52 = vld [vmem:[#allocation10 + $0xabc] ss:$28 sps:$4 sm:$0xff]  }
 0x1e4   :  { %3139 = vmatpush1.bf16.msra.mxu0 %v5726_v13  ;;  %v597_v13 = vmax.f32 %v590_v60, 0.0  ;;  %v5839_v60 = vld [vmem:[#allocation10 + $0x5c8] ss:$28 sps:$4 sm:$0xff]  }
 0x1e5   :  { %3344 = vmatpush1.bf16.msra.mxu1 %v5729_v15  ;;  %3140 = vmatprep.subr.bf16.mxu0 %v5734_v17  ;;  %v5789_v15 = vld [vmem:[#allocation10 + $0x1d8] ss:$28 sps:$4 sm:$0xff]   ;;  %v5786_v17 = vld [vmem:[#allocation10 + $0x8c0] ss:$28 sps:$4 sm:$0xff]  }
 0x1e6   :  { %3345 = vmatprep.subr.bf16.mxu1 %v5737_v18  ;;  %v6892_v18 = vpack.c.bf16 %v597_v13, %v597_v13  ;;  %v5841_v13 = vld [vmem:[#allocation10 + $0xb28] ss:$28 sps:$4 sm:$0xff]  }
 0x1e8   :  { %3141 = vmatpush1.bf16.msra.mxu0 %v5732_v20  ;;  %v5793_v20 = vld [vmem:[#allocation10 + $0x8fc] ss:$28 sps:$4 sm:$0xff]  }
 0x1e9   :  { %3346 = vmatpush1.bf16.msra.mxu1 %v5735_v22  ;;  %3151 = vmatprep.subr.bf16.mxu0 %v5740_v24  ;;  %v5791_v22 = vld [vmem:[#allocation10 + $0x8f8] ss:$28 sps:$4 sm:$0xff]   ;;  %v5795_v24 = vld [vmem:[#allocation10 + $0x50] ss:$28 sps:$4 sm:$0xff]  }
 0x1ea   :  { %3356 = vmatprep.subr.bf16.mxu1 %v5743_v25  ;;  %v5798_v25 = vld [vmem:[#allocation10 + $0x934] ss:$28 sps:$4 sm:$0xff]  }
 0x1eb   :  { %3143 = vmatmul.mubr.bf16.vlgmr.msra.gmra.mrb[8].mxu0 %v6833_v58 }
 0x1ec   :  { %3152 = vmatpush1.bf16.msra.mxu0 %v5738_v27  ;;  %3348 = vmatmul.mubr.bf16.vlgmr.msra.gmra.mrb[8].mxu1 %v6877_v5  ;;  %v5796_v27 = vld [vmem:[#allocation10 + $0x930] ss:$28 sps:$4 sm:$0xff]  }
 0x1ed   :  { %3357 = vmatpush1.bf16.msra.mxu1 %v5741_v19  ;;  %3153 = vmatprep.subr.bf16.mxu0 %v5746_v30  ;;  %v5800_v19 = vld [vmem:[#allocation10 + $0x88] ss:$28 sps:$4 sm:$0xff]  }
 0x1ee   :  { %3358 = vmatprep.subr.bf16.mxu1 %v5749_v31  ;;  %3388 = vmatprep.mubr.bf16.mxu1 %v6555_v0  ;;  %v5803_v30 = vld [vmem:[#allocation10 + $0x96c] ss:$28 sps:$4 sm:$0xff]   ;;  %v5804_v31 = vld [vmem:[#allocation10 + $0x280] ss:$28 sps:$4 sm:$0xff]  }
 0x1ef   :  { %3183 = vmatprep.mubr.bf16.mxu0 %v6853_v42 }
 0x1f0   :  { %3154 = vmatpush1.bf16.msra.mxu0 %v5744_v29  ;;  %v5801_v29 = vld [vmem:[#allocation10 + $0x968] ss:$28 sps:$4 sm:$0xff]  }
 0x1f1   :  { %3359 = vmatpush1.bf16.msra.mxu1 %v5747_v33  ;;  %3155 = vmatprep.subr.bf16.mxu0 %v5752_v34  ;;  %v5805_v33 = vld [vmem:[#allocation10 + $0xc0] ss:$28 sps:$4 sm:$0xff]  }
 0x1f2   :  { %3360 = vmatprep.subr.bf16.mxu1 %v5755_v35  ;;  %v5808_v34 = vld [vmem:[#allocation10 + $0x9a4] ss:$28 sps:$4 sm:$0xff]   ;;  %v5809_v35 = vld [vmem:[#allocation10 + $0x2b8] ss:$28 sps:$4 sm:$0xff]  }
 0x1f4   :  { %3156 = vmatpush1.bf16.msra.mxu0 %v5750_v28  ;;  %v5806_v28 = vld [vmem:[#allocation10 + $0x9a0] ss:$28 sps:$4 sm:$0xff]  }
 0x1f5   :  { %3361 = vmatpush1.bf16.msra.mxu1 %v5753_v32  ;;  %3157 = vmatprep.subr.bf16.mxu0 %v5758_v36  ;;  %v5810_v32 = vld [vmem:[#allocation10 + $0xf8] ss:$28 sps:$4 sm:$0xff]  }
 0x1f6   :  { %3362 = vmatprep.subr.bf16.mxu1 %v5761_v38  ;;  %v5813_v36 = vld [vmem:[#allocation10 + $0x9dc] ss:$28 sps:$4 sm:$0xff]   ;;  %v5814_v38 = vld [vmem:[#allocation10 + $0x2f0] ss:$28 sps:$4 sm:$0xff]  }
 0x1f8   :  { %3158 = vmatpush1.bf16.msra.mxu0 %v5756_v41  ;;  %v5815_v41 = vld [vmem:[#allocation10 + $0x130] ss:$28 sps:$4 sm:$0xff]  }
 0x1f9   :  { %3363 = vmatpush1.bf16.msra.mxu1 %v5759_v45  ;;  %3159 = vmatprep.subr.bf16.mxu0 %v5764_v46  ;;  %v5819_v45 = vld [vmem:[#allocation10 + $0x328] ss:$28 sps:$4 sm:$0xff]   ;;  %v5816_v46 = vld [vmem:[#allocation10 + $0xa10] ss:$28 sps:$4 sm:$0xff]  }
 0x1fa   :  { %3364 = vmatprep.subr.bf16.mxu1 %v5767_v47  ;;  %v5820_v47 = vld [vmem:[#allocation10 + $0x168] ss:$28 sps:$4 sm:$0xff]  }
 0x1fc   :  { %3160 = vmatpush1.bf16.msra.mxu0 %v5762_v44  ;;  %v5821_v44 = vld [vmem:[#allocation10 + $0xa48] ss:$28 sps:$4 sm:$0xff]  }
 0x1fd   :  { %3365 = vmatpush1.bf16.msra.mxu1 %v5765_v63  ;;  %3161 = vmatprep.subr.bf16.mxu0 %v5770_v56  ;;  %v5825_v63 = vld [vmem:[#allocation10 + $0x1a0] ss:$28 sps:$4 sm:$0xff]  }
 0x1fe   :  { %3366 = vmatprep.subr.bf16.mxu1 %v5773_v49  ;;  %v5828_v56 = vld [vmem:[#allocation10 + $0xa84] ss:$28 sps:$4 sm:$0xff]   ;;  %v5829_v49 = vld [vmem:[#allocation10 + $0x558] ss:$28 sps:$4 sm:$0xff]  }
 0x200   :  { %3162 = vmatpush1.bf16.msra.mxu0 %v5768_v51  ;;  %v5830_v51 = vld [vmem:[#allocation10 + $0x398] ss:$28 sps:$4 sm:$0xff]  }
 0x201   :  { %3367 = vmatpush1.bf16.msra.mxu1 %v5771_v53  ;;  %3163 = vmatprep.subr.bf16.mxu0 %v5776_v54  ;;  %v5834_v53 = vld [vmem:[#allocation10 + $0x590] ss:$28 sps:$4 sm:$0xff]   ;;  %v5831_v54 = vld [vmem:[#allocation10 + $0xab8] ss:$28 sps:$4 sm:$0xff]  }
 0x202   :  { %3368 = vmatprep.subr.bf16.mxu1 %v5779_v2  ;;  %v5835_v2 = vld [vmem:[#allocation10 + $0x3d0] ss:$28 sps:$4 sm:$0xff]  }
 0x204   :  { %3164 = vmatpush1.bf16.msra.mxu0 %v5774_v55  ;;  %v5838_v55 = vld [vmem:[#allocation10 + $0xaf4] ss:$28 sps:$4 sm:$0xff]  }
 0x205   :  { %3369 = vmatpush1.bf16.msra.mxu1 %v5777_v6  ;;  %3165 = vmatprep.subr.bf16.mxu0 %v5782_v7  ;;  %v5836_v6 = vld [vmem:[#allocation10 + $0xaf0] ss:$28 sps:$4 sm:$0xff]   ;;  %v5840_v7 = vld [vmem:[#allocation10 + $0x408] ss:$28 sps:$4 sm:$0xff]  }
 0x206   :  { %3370 = vmatprep.subr.bf16.mxu1 %v5785_v8  ;;  %v5843_v8 = vld [vmem:[#allocation10 + $0xb2c] ss:$28 sps:$4 sm:$0xff]  }
 0x208   :  { %3166 = vmatpush1.bf16.msra.mxu0 %v5780_v11  ;;  %v5844_v11 = vld [vmem:[#allocation10 + $0x600] ss:$28 sps:$4 sm:$0xff]  }
 0x209   :  { %3371 = vmatpush1.bf16.msra.mxu1 %v5783_v10  ;;  %3167 = vmatprep.subr.bf16.mxu0 %v5788_v14  ;;  %v5845_v10 = vld [vmem:[#allocation10 + $0x440] ss:$28 sps:$4 sm:$0xff]  }
 0x20a   :  { %5373 = vmatprep.subr.bf16.mxu1 %v5789_v15  ;;  %v5848_v14 = vld [vmem:[#allocation10 + $0xb64] ss:$28 sps:$4 sm:$0xff]   ;;  %v5849_v15 = vld [vmem:[#allocation10 + $0x638] ss:$28 sps:$4 sm:$0xff]  }
 0x20c   :  { %3389 = vmatmul.mubr.bf16.vlgmr.msra.gmra.mrb[8].mxu1 %v6892_v18  ;;  %3168 = vmatpush1.bf16.msra.mxu0 %v5786_v17  ;;  %v5846_v17 = vld [vmem:[#allocation10 + $0xb60] ss:$28 sps:$4 sm:$0xff]  }
 0x20d   :  { %5374 = vmatpush3.bf16.msra.mxu1 %v5790_v23  ;;  %3593 = vmatprep.mubr.bf16.mxu1 %v6831_v57  ;;  %v5850_v23 = vld [vmem:[#allocation10 + $0x478] ss:$28 sps:$4 sm:$0xff]  }
 0x20e   :  { %3169 = vmatprep.subr.bf16.mxu0 %v5793_v20  ;;  %5375 = vmatprep.subr.bf16.mxu1 %v5794_v21  ;;  %v5853_v20 = vld [vmem:[#allocation10 + $0xb9c] ss:$28 sps:$4 sm:$0xff]   ;;  %v5854_v21 = vld [vmem:[#allocation10 + $0x670] ss:$28 sps:$4 sm:$0xff]  }
 0x210   :  { %3170 = vmatpush1.bf16.msra.mxu0 %v5791_v22  ;;  %v5851_v22 = vld [vmem:[#allocation10 + $0xb98] ss:$28 sps:$4 sm:$0xff]  }
 0x211   :  { %5376 = vmatpush3.bf16.msra.mxu1 %v5795_v24  ;;  %3171 = vmatprep.subr.bf16.mxu0 %v5798_v25  ;;  %v5855_v24 = vld [vmem:[#allocation10 + $0x4b0] ss:$28 sps:$4 sm:$0xff]  }
 0x212   :  { %5377 = vmatprep.subr.bf16.mxu1 %v5799_v26  ;;  %v5858_v25 = vld [vmem:[#allocation10 + $0xbd4] ss:$28 sps:$4 sm:$0xff]   ;;  %v5859_v26 = vld [vmem:[#allocation10 + $0x6a8] ss:$28 sps:$4 sm:$0xff]  }
 0x214   :  { %3172 = vmatpush1.bf16.msra.mxu0 %v5796_v27  ;;  %v5856_v27 = vld [vmem:[#allocation10 + $0xbd0] ss:$28 sps:$4 sm:$0xff]  }
 0x215   :  { %5378 = vmatpush3.bf16.msra.mxu1 %v5800_v19  ;;  %3173 = vmatprep.subr.bf16.mxu0 %v5803_v30  ;;  %v5860_v19 = vld [vmem:[#allocation10 + $0x4e8] ss:$28 sps:$4 sm:$0xff]  }
 0x216   :  { %5379 = vmatprep.subr.bf16.mxu1 %v5804_v31  ;;  %v5863_v30 = vld [vmem:[#allocation10 + $0xc0c] ss:$28 sps:$4 sm:$0xff]   ;;  %v5864_v31 = vld [vmem:[#allocation10 + $0x6e0] ss:$28 sps:$4 sm:$0xff]  }
 0x218   :  { %3174 = vmatpush1.bf16.msra.mxu0 %v5801_v29  ;;  %v5861_v29 = vld [vmem:[#allocation10 + $0xc08] ss:$28 sps:$4 sm:$0xff]  }
 0x219   :  { %5380 = vmatpush3.bf16.msra.mxu1 %v5805_v33  ;;  %3175 = vmatprep.subr.bf16.mxu0 %v5808_v34  ;;  %v5865_v33 = vld [vmem:[#allocation10 + $0x520] ss:$28 sps:$4 sm:$0xff]   ;;  %v5868_v34 = vld [vmem:[#allocation10 + $0xc] ss:$28 sps:$4 sm:$0xff]  }
 0x21a   :  { %5381 = vmatprep.subr.bf16.mxu1 %v5809_v35  ;;  %v5869_v35 = vld [vmem:[#allocation10 + $0x8d8] ss:$28 sps:$4 sm:$0xff]  }
 0x21c   :  { %3176 = vmatpush1.bf16.msra.mxu0 %v5806_v28  ;;  %v5866_v28 = vld [vmem:[#allocation10 + $0x8] ss:$28 sps:$4 sm:$0xff]  }
 0x21d   :  { %5382 = vmatpush3.bf16.msra.mxu1 %v5810_v32  ;;  %3177 = vmatprep.subr.bf16.mxu0 %v5813_v36  ;;  %v5870_v32 = vld [vmem:[#allocation10 + $0x718] ss:$28 sps:$4 sm:$0xff]   ;;  %v5873_v36 = vld [vmem:[#allocation10 + $0x44] ss:$28 sps:$4 sm:$0xff]  }
 0x21e   :  { %5383 = vmatprep.subr.bf16.mxu1 %v5814_v38  ;;  %v5874_v38 = vld [vmem:[#allocation10 + $0x910] ss:$28 sps:$4 sm:$0xff]  }
 0x220   :  { %3178 = vmatpush1.bf16.msra.mxu0 %v5811_v39  ;;  %v5871_v39 = vld [vmem:[#allocation10 + $0x40] ss:$28 sps:$4 sm:$0xff]  }
 0x221   :  { %5384 = vmatpush3.bf16.msra.mxu1 %v5815_v41  ;;  %3179 = vmatprep.subr.bf16.mxu0 %v5818_v43  ;;  %v5875_v41 = vld [vmem:[#allocation10 + $0x750] ss:$28 sps:$4 sm:$0xff]   ;;  %v5878_v43 = vld [vmem:[#allocation10 + $0x7c] ss:$28 sps:$4 sm:$0xff]  }
 0x222   :  { %5385 = vmatprep.subr.bf16.mxu1 %v5819_v45  ;;  %v5879_v45 = vld [vmem:[#allocation10 + $0x948] ss:$28 sps:$4 sm:$0xff]  }
 0x224   :  { %3180 = vmatpush1.bf16.msra.mxu0 %v5816_v46  ;;  %v5876_v46 = vld [vmem:[#allocation10 + $0x78] ss:$28 sps:$4 sm:$0xff]  }
 0x225   :  { %5386 = vmatpush3.bf16.msra.mxu1 %v5820_v47  ;;  %3181 = vmatprep.subr.bf16.mxu0 %v5823_v48  ;;  %v5880_v47 = vld [vmem:[#allocation10 + $0x788] ss:$28 sps:$4 sm:$0xff]   ;;  %v5883_v48 = vld [vmem:[#allocation10 + $0xb4] ss:$28 sps:$4 sm:$0xff]  }
 0x226   :  { %5387 = vmatprep.subr.bf16.mxu1 %v5824_v62  ;;  %v5884_v62 = vld [vmem:[#allocation10 + $0x980] ss:$28 sps:$4 sm:$0xff]  }
 0x228   :  { %3182 = vmatpush1.bf16.msra.mxu0 %v5821_v44  ;;  %v5881_v44 = vld [vmem:[#allocation10 + $0xb0] ss:$28 sps:$4 sm:$0xff]  }
 0x229   :  { %5388 = vmatpush3.bf16.msra.mxu1 %v5825_v63  ;;  %3192 = vmatprep.subr.bf16.mxu0 %v5828_v56  ;;  %v5885_v63 = vld [vmem:[#allocation10 + $0x7c0] ss:$28 sps:$4 sm:$0xff]   ;;  %v5888_v56 = vld [vmem:[#allocation10 + $0xec] ss:$28 sps:$4 sm:$0xff]  }
 0x22a   :  { %5395 = vmatprep.subr.bf16.mxu1 %v5829_v49  ;;  %v5889_v49 = vld [vmem:[#allocation10 + $0x9b8] ss:$28 sps:$4 sm:$0xff]  }
 0x22b   :  { %3184 = vmatmul.mubr.bf16.vlgmr.msra.gmra.mrb[8].mxu0 %v6877_v5 }
 0x22c   :  { %3594 = vmatmul.mubr.bf16.vlgmr.msra.gmra.mrb[12].mxu1 %v6837_v1  ;;  %3193 = vmatpush1.bf16.msra.mxu0 %v5826_v50  ;;  %v5886_v50 = vld [vmem:[#allocation10 + $0xe8] ss:$28 sps:$4 sm:$0xff]  }
 0x22d   :  { %5396 = vmatpush3.bf16.msra.mxu1 %v5830_v51  ;;  %3633 = vmatprep.mubr.bf16.mxu1 %v6835_v59  ;;  %v5890_v51 = vld [vmem:[#allocation10 + $0x7f8] ss:$28 sps:$4 sm:$0xff]  }
 0x22e   :  { %3194 = vmatprep.subr.bf16.mxu0 %v5833_v52  ;;  %5397 = vmatprep.subr.bf16.mxu1 %v5834_v53  ;;  %v5893_v52 = vld [vmem:[#allocation10 + $0x124] ss:$28 sps:$4 sm:$0xff]   ;;  %v5894_v53 = vld [vmem:[#allocation10 + $0x9f0] ss:$28 sps:$4 sm:$0xff]  }
 0x22f   :  { %3224 = vmatprep.mubr.bf16.mxu0 %v6555_v0 }
 0x230   :  { %3195 = vmatpush1.bf16.msra.mxu0 %v5831_v54  ;;  %v5891_v54 = vld [vmem:[#allocation10 + $0x120] ss:$28 sps:$4 sm:$0xff]  }
 0x231   :  { %5398 = vmatpush3.bf16.msra.mxu1 %v5835_v2  ;;  %3196 = vmatprep.subr.bf16.mxu0 %v5838_v55  ;;  %v5895_v2 = vld [vmem:[#allocation10 + $0x830] ss:$28 sps:$4 sm:$0xff]   ;;  %v5898_v55 = vld [vmem:[#allocation10 + $0x15c] ss:$28 sps:$4 sm:$0xff]  }
 0x232   :  { %5399 = vmatprep.subr.bf16.mxu1 %v5839_v60  ;;  %v5899_v60 = vld [vmem:[#allocation10 + $0xa28] ss:$28 sps:$4 sm:$0xff]  }
 0x234   :  { %3197 = vmatpush1.bf16.msra.mxu0 %v5836_v6  ;;  %v5896_v6 = vld [vmem:[#allocation10 + $0x158] ss:$28 sps:$4 sm:$0xff]  }
 0x235   :  { %5400 = vmatpush3.bf16.msra.mxu1 %v5840_v7  ;;  %3198 = vmatprep.subr.bf16.mxu0 %v5843_v8  ;;  %v5900_v7 = vld [vmem:[#allocation10 + $0x868] ss:$28 sps:$4 sm:$0xff]   ;;  %v5903_v8 = vld [vmem:[#allocation10 + $0x194] ss:$28 sps:$4 sm:$0xff]  }
 0x236   :  { %5401 = vmatprep.subr.bf16.mxu1 %v5844_v11  ;;  %v5904_v11 = vld [vmem:[#allocation10 + $0xa60] ss:$28 sps:$4 sm:$0xff]  }
 0x238   :  { %3199 = vmatpush1.bf16.msra.mxu0 %v5841_v13  ;;  %v5901_v13 = vld [vmem:[#allocation10 + $0x190] ss:$28 sps:$4 sm:$0xff]  }
 0x239   :  { %5402 = vmatpush3.bf16.msra.mxu1 %v5845_v10  ;;  %3200 = vmatprep.subr.bf16.mxu0 %v5848_v14  ;;  %v5905_v10 = vld [vmem:[#allocation10 + $0x8a0] ss:$28 sps:$4 sm:$0xff]   ;;  %v5908_v14 = vld [vmem:[#allocation10 + $0x1cc] ss:$28 sps:$4 sm:$0xff]  }
 0x23a   :  { %5403 = vmatprep.subr.bf16.mxu1 %v5849_v15  ;;  %v5906_v15 = vld [vmem:[#allocation10 + $0x1c8] ss:$28 sps:$4 sm:$0xff]  }
 0x23c   :  { %3201 = vmatpush1.bf16.msra.mxu0 %v5846_v17  ;;  %v5909_v17 = vld [vmem:[#allocation10 + $0xa98] ss:$28 sps:$4 sm:$0xff]  }
 0x23d   :  { %5404 = vmatpush3.bf16.msra.mxu1 %v5850_v23  ;;  %3202 = vmatprep.subr.bf16.mxu0 %v5853_v20  ;;  %v5912_v23 = vld [vmem:[#allocation10 + $0x204] ss:$28 sps:$4 sm:$0xff]  }
 0x23e   :  { %5405 = vmatprep.subr.bf16.mxu1 %v5854_v21  ;;  %v5910_v20 = vld [vmem:[#allocation10 + $0x200] ss:$28 sps:$4 sm:$0xff]   ;;  %v5913_v21 = vld [vmem:[#allocation10 + $0xad0] ss:$28 sps:$4 sm:$0xff]  }
 0x240   :  { %3203 = vmatpush1.bf16.msra.mxu0 %v5851_v22  ;;  %v5916_v22 = vld [vmem:[#allocation10 + $0x23c] ss:$28 sps:$4 sm:$0xff]  }
 0x241   :  { %5406 = vmatpush3.bf16.msra.mxu1 %v5855_v24  ;;  %3204 = vmatprep.subr.bf16.mxu0 %v5858_v25  ;;  %v5914_v24 = vld [vmem:[#allocation10 + $0x238] ss:$28 sps:$4 sm:$0xff]   ;;  %v5917_v25 = vld [vmem:[#allocation10 + $0xb08] ss:$28 sps:$4 sm:$0xff]  }
 0x242   :  { %5407 = vmatprep.subr.bf16.mxu1 %v5859_v26  ;;  %v5920_v26 = vld [vmem:[#allocation10 + $0x274] ss:$28 sps:$4 sm:$0xff]  }
 0x244   :  { %3205 = vmatpush1.bf16.msra.mxu0 %v5856_v27  ;;  %v5918_v27 = vld [vmem:[#allocation10 + $0x270] ss:$28 sps:$4 sm:$0xff]  }
 0x245   :  { %5408 = vmatpush3.bf16.msra.mxu1 %v5860_v19  ;;  %3206 = vmatprep.subr.bf16.mxu0 %v5863_v30  ;;  %v5921_v19 = vld [vmem:[#allocation10 + $0xb40] ss:$28 sps:$4 sm:$0xff]   ;;  %v5924_v30 = vld [vmem:[#allocation10 + $0x2ac] ss:$28 sps:$4 sm:$0xff]  }
 0x246   :  { %5409 = vmatprep.subr.bf16.mxu1 %v5864_v31  ;;  %v5922_v31 = vld [vmem:[#allocation10 + $0x2a8] ss:$28 sps:$4 sm:$0xff]  }
 0x248   :  { %3207 = vmatpush1.bf16.msra.mxu0 %v5861_v29  ;;  %v5925_v29 = vld [vmem:[#allocation10 + $0xb78] ss:$28 sps:$4 sm:$0xff]  }
 0x249   :  { %5410 = vmatpush3.bf16.msra.mxu1 %v5865_v33  ;;  %3233 = vmatprep.subr.bf16.mxu0 %v5868_v34  ;;  %v5928_v33 = vld [vmem:[#allocation10 + $0x2e4] ss:$28 sps:$4 sm:$0xff]  }
 0x24a   :  { %5417 = vmatprep.subr.bf16.mxu1 %v5869_v35  ;;  %v5926_v34 = vld [vmem:[#allocation10 + $0x2e0] ss:$28 sps:$4 sm:$0xff]   ;;  %v5929_v35 = vld [vmem:[#allocation10 + $0xbb0] ss:$28 sps:$4 sm:$0xff]  }
 0x24b   :  { %3225 = vmatmul.mubr.bf16.vlgmr.msra.gmra.mrb[8].mxu0 %v6892_v18 }
 0x24c   :  { %3634 = vmatmul.mubr.bf16.vlgmr.msra.gmra.mrb[16].mxu1 %v6833_v58  ;;  %3234 = vmatpush1.bf16.msra.mxu0 %v5866_v28  ;;  %v5932_v28 = vld [vmem:[#allocation10 + $0x31c] ss:$28 sps:$4 sm:$0xff]  }
 0x24d   :  { %3265 = vmatprep.mubr.bf16.mxu0 %v6831_v57  ;;  %5418 = vmatpush3.bf16.msra.mxu1 %v5870_v32  ;;  %v5930_v32 = vld [vmem:[#allocation10 + $0x318] ss:$28 sps:$4 sm:$0xff]  }
 0x24e   :  { %3673 = vmatprep.mubr.bf16.mxu1 %v6853_v42  ;;  %3235 = vmatprep.subr.bf16.mxu0 %v5873_v36  ;;  %v5933_v36 = vld [vmem:[#allocation10 + $0xbe8] ss:$28 sps:$4 sm:$0xff]  }
 0x24f   :  { %5419 = vmatprep.subr.bf16.mxu1 %v5874_v38  ;;  %v5936_v38 = vld [vmem:[#allocation10 + $0x354] ss:$28 sps:$4 sm:$0xff]  }
 0x250   :  { %3236 = vmatpush1.bf16.msra.mxu0 %v5871_v39  ;;  %v5934_v39 = vld [vmem:[#allocation10 + $0x350] ss:$28 sps:$4 sm:$0xff]  }
 0x251   :  { %5420 = vmatpush3.bf16.msra.mxu1 %v5875_v41  ;;  %3237 = vmatprep.subr.bf16.mxu0 %v5878_v43  ;;  %v5937_v41 = vld [vmem:[#allocation10 + $0xc20] ss:$28 sps:$4 sm:$0xff]   ;;  %v5940_v43 = vld [vmem:[#allocation10 + $0x14] ss:$28 sps:$4 sm:$0xff]  }
 0x252   :  { %5421 = vmatprep.subr.bf16.mxu1 %v5879_v45  ;;  %v5938_v45 = vld [vmem:[#allocation10 + $0x10] ss:$28 sps:$4 sm:$0xff]  }
 0x254   :  { %3238 = vmatpush1.bf16.msra.mxu0 %v5876_v46  ;;  %v6036_v46 = vld [vmem:[#allocation14 + $0x4] ss:$8 sps:$4 sm:$0xff]  }
 0x255   :  { %5422 = vmatpush3.bf16.msra.mxu1 %v5880_v47  ;;  %3239 = vmatprep.subr.bf16.mxu0 %v5883_v48  ;;  %v5943_v47 = vld [vmem:[#allocation10 + $0x4c] ss:$28 sps:$4 sm:$0xff]   ;;  %v6034_v48 = vld [vmem:[#allocation14] ss:$8 sps:$4 sm:$0xff]  }
 0x256   :  { %5423 = vmatprep.subr.bf16.mxu1 %v5884_v62  ;;  %v5941_v62 = vld [vmem:[#allocation10 + $0x48] ss:$28 sps:$4 sm:$0xff]  }
 0x258   :  { %3240 = vmatpush1.bf16.msra.mxu0 %v5881_v44  ;;  %v6042_v44 = vld [vmem:[#allocation14 + $0x14] ss:$8 sps:$4 sm:$0xff]  }
 0x259   :  { %5424 = vmatpush3.bf16.msra.mxu1 %v5885_v63  ;;  %3241 = vmatprep.subr.bf16.mxu0 %v5888_v56  ;;  %v5946_v63 = vld [vmem:[#allocation10 + $0x84] ss:$28 sps:$4 sm:$0xff]  }
 0x25a   :  { %5425 = vmatprep.subr.bf16.mxu1 %v5889_v49  ;;  %v5944_v56 = vld [vmem:[#allocation10 + $0x80] ss:$28 sps:$4 sm:$0xff]  }
 0x25b   :  { %v6048_v49 = vld [vmem:[#allocation14 + $0x24] ss:$8 sps:$4 sm:$0xff]  }
 0x25c   :  { %3242 = vmatpush1.bf16.msra.mxu0 %v5886_v50  ;;  %v5949_v50 = vld [vmem:[#allocation10 + $0xbc] ss:$28 sps:$4 sm:$0xff]  }
 0x25d   :  { %5426 = vmatpush3.bf16.msra.mxu1 %v5890_v51  ;;  %3243 = vmatprep.subr.bf16.mxu0 %v5893_v52  ;;  %v6046_v51 = vld [vmem:[#allocation14 + $0x20] ss:$8 sps:$4 sm:$0xff]  }
 0x25e   :  { %5427 = vmatprep.subr.bf16.mxu1 %v5894_v53  ;;  %v5947_v52 = vld [vmem:[#allocation10 + $0xb8] ss:$28 sps:$4 sm:$0xff]   ;;  %v6054_v53 = vld [vmem:[#allocation14 + $0x34] ss:$8 sps:$4 sm:$0xff]  }
 0x260   :  { %3244 = vmatpush1.bf16.msra.mxu0 %v5891_v54  ;;  %v5952_v54 = vld [vmem:[#allocation10 + $0xf4] ss:$28 sps:$4 sm:$0xff]  }
 0x261   :  { %5428 = vmatpush3.bf16.msra.mxu1 %v5895_v2  ;;  %3245 = vmatprep.subr.bf16.mxu0 %v5898_v55  ;;  %v5950_v2 = vld [vmem:[#allocation10 + $0xf0] ss:$28 sps:$4 sm:$0xff]   ;;  %v6060_v55 = vld [vmem:[#allocation14 + $0x44] ss:$8 sps:$4 sm:$0xff]  }
 0x262   :  { %5429 = vmatprep.subr.bf16.mxu1 %v5899_v60  ;;  %v5955_v60 = vld [vmem:[#allocation10 + $0x12c] ss:$28 sps:$4 sm:$0xff]  }
 0x264   :  { %3246 = vmatpush1.bf16.msra.mxu0 %v5896_v6  ;;  %v6058_v6 = vld [vmem:[#allocation14 + $0x40] ss:$8 sps:$4 sm:$0xff]  }
 0x265   :  { %5430 = vmatpush3.bf16.msra.mxu1 %v5900_v7  ;;  %3247 = vmatprep.subr.bf16.mxu0 %v5903_v8  ;;  %v5953_v7 = vld [vmem:[#allocation10 + $0x128] ss:$28 sps:$4 sm:$0xff]  }
 0x266   :  { %5431 = vmatprep.subr.bf16.mxu1 %v5904_v11  ;;  %v5958_v8 = vld [vmem:[#allocation10 + $0x164] ss:$28 sps:$4 sm:$0xff]  }
 0x267   :  { %v6066_v11 = vld [vmem:[#allocation14 + $0x54] ss:$8 sps:$4 sm:$0xff]  }
 0x268   :  { %3248 = vmatpush1.bf16.msra.mxu0 %v5901_v13  ;;  %v6064_v13 = vld [vmem:[#allocation14 + $0x50] ss:$8 sps:$4 sm:$0xff]  }
 0x269   :  { %5432 = vmatpush3.bf16.msra.mxu1 %v5905_v10  ;;  %3249 = vmatprep.subr.bf16.mxu0 %v5908_v14  ;;  %v5956_v10 = vld [vmem:[#allocation10 + $0x160] ss:$28 sps:$4 sm:$0xff]  }
 0x26a   :  { %5454 = vmatprep.subr.bf16.mxu1 %v6556_v16  ;;  %v5961_v14 = vld [vmem:[#allocation10 + $0x19c] ss:$28 sps:$4 sm:$0xff]  }
 0x26c   :  { %3674 = vmatmul.mubr.bf16.vlgmr.msra.gmra.mrb[20].mxu1 %v6877_v5  ;;  %3250 = vmatpush1.bf16.msra.mxu0 %v5906_v15  ;;  %v6072_v15 = vld [vmem:[#allocation14 + $0x64] ss:$8 sps:$4 sm:$0xff]  }
 0x26d   :  { %5455 = vmatpush3.bf16.msra.mxu1 %v5909_v17  ;;  %3251 = vmatprep.subr.bf16.mxu0 %v5912_v23  ;;  %v6070_v17 = vld [vmem:[#allocation14 + $0x60] ss:$8 sps:$4 sm:$0xff]  }
 0x26e   :  { %5456 = vmatprep.subr.bf16.mxu1 %v6556_v16  ;;  %5470 = vmatprep.mubr.msk.bf16.mxu1 %vm6557_vm2, %v6556_v16  ;;  %v5959_v23 = vld [vmem:[#allocation10 + $0x198] ss:$28 sps:$4 sm:$0xff]  }
 0x270   :  { %3252 = vmatpush1.bf16.msra.mxu0 %v5910_v20  ;;  %v5964_v20 = vld [vmem:[#allocation10 + $0x1d4] ss:$28 sps:$4 sm:$0xff]  }
 0x271   :  { %5457 = vmatpush3.bf16.msra.mxu1 %v5913_v21  ;;  %3253 = vmatprep.subr.bf16.mxu0 %v5916_v22  ;;  %v6078_v21 = vld [vmem:[#allocation14 + $0x74] ss:$8 sps:$4 sm:$0xff]   ;;  %v6076_v22 = vld [vmem:[#allocation14 + $0x70] ss:$8 sps:$4 sm:$0xff]  }
 0x272   :  { %5458 = vmatprep.subr.bf16.mxu1 %v6556_v16 }
 0x274   :  { %3254 = vmatpush1.bf16.msra.mxu0 %v5914_v24  ;;  %v5962_v24 = vld [vmem:[#allocation10 + $0x1d0] ss:$28 sps:$4 sm:$0xff]  }
 0x275   :  { %5459 = vmatpush3.bf16.msra.mxu1 %v5917_v25  ;;  %3255 = vmatprep.subr.bf16.mxu0 %v5920_v26  ;;  %v5967_v25 = vld [vmem:[#allocation10 + $0x20c] ss:$28 sps:$4 sm:$0xff]   ;;  %v6084_v26 = vld [vmem:[#allocation14 + $0x84] ss:$8 sps:$4 sm:$0xff]  }
 0x276   :  { %5460 = vmatprep.subr.bf16.mxu1 %v6556_v16 }
 0x278   :  { %3256 = vmatpush1.bf16.msra.mxu0 %v5918_v27  ;;  %v6082_v27 = vld [vmem:[#allocation14 + $0x80] ss:$8 sps:$4 sm:$0xff]  }
 0x279   :  { %5461 = vmatpush3.bf16.msra.mxu1 %v5921_v19  ;;  %3257 = vmatprep.subr.bf16.mxu0 %v5924_v30  ;;  %v5965_v19 = vld [vmem:[#allocation10 + $0x208] ss:$28 sps:$4 sm:$0xff]  }
 0x27a   :  { %5462 = vmatprep.subr.bf16.mxu1 %v6556_v16  ;;  %v5970_v30 = vld [vmem:[#allocation10 + $0x244] ss:$28 sps:$4 sm:$0xff]  }
 0x27c   :  { %3258 = vmatpush1.bf16.msra.mxu0 %v5922_v31  ;;  %v6090_v31 = vld [vmem:[#allocation14 + $0x94] ss:$8 sps:$4 sm:$0xff]  }
 0x27d   :  { %5463 = vmatpush3.bf16.msra.mxu1 %v5925_v29  ;;  %3259 = vmatprep.subr.bf16.mxu0 %v5928_v33  ;;  %v6088_v29 = vld [vmem:[#allocation14 + $0x90] ss:$8 sps:$4 sm:$0xff]  }
 0x27e   :  { %5464 = vmatprep.subr.bf16.mxu1 %v6556_v16  ;;  %v5968_v33 = vld [vmem:[#allocation10 + $0x240] ss:$28 sps:$4 sm:$0xff]  }
 0x280   :  { %3260 = vmatpush1.bf16.msra.mxu0 %v5926_v34  ;;  %v5973_v34 = vld [vmem:[#allocation10 + $0x27c] ss:$28 sps:$4 sm:$0xff]  }
 0x281   :  { %5465 = vmatpush3.bf16.msra.mxu1 %v5929_v35  ;;  %3261 = vmatprep.subr.bf16.mxu0 %v5932_v28  ;;  %v6096_v35 = vld [vmem:[#allocation14 + $0xa4] ss:$8 sps:$4 sm:$0xff]   ;;  %v6094_v28 = vld [vmem:[#allocation14 + $0xa0] ss:$8 sps:$4 sm:$0xff]  }
 0x282   :  { %5466 = vmatprep.subr.bf16.mxu1 %v6556_v16 }
 0x284   :  { %3262 = vmatpush1.bf16.msra.mxu0 %v5930_v32  ;;  %v5971_v32 = vld [vmem:[#allocation10 + $0x278] ss:$28 sps:$4 sm:$0xff]  }
 0x285   :  { %5467 = vmatpush3.bf16.msra.mxu1 %v5933_v36  ;;  %3263 = vmatprep.subr.bf16.mxu0 %v5936_v38  ;;  %v5976_v36 = vld [vmem:[#allocation10 + $0x2b4] ss:$28 sps:$4 sm:$0xff]   ;;  %v6102_v38 = vld [vmem:[#allocation14 + $0xb4] ss:$8 sps:$4 sm:$0xff]  }
 0x286   :  { %5468 = vmatprep.subr.bf16.mxu1 %v6556_v16  ;;  %v6040_v16 = vld [vmem:[#allocation14 + $0x10] ss:$8 sps:$4 sm:$0xff]  }
 0x288   :  { %3264 = vmatpush1.bf16.msra.mxu0 %v5934_v39  ;;  %v6100_v39 = vld [vmem:[#allocation14 + $0xb0] ss:$8 sps:$4 sm:$0xff]  }
 0x289   :  { %5469 = vmatpush3.bf16.msra.mxu1 %v5937_v41  ;;  %3397 = vmatprep.subr.bf16.mxu0 %v5940_v43  ;;  %v5974_v41 = vld [vmem:[#allocation10 + $0x2b0] ss:$28 sps:$4 sm:$0xff]  }
 0x28a   :  { %4654 = vmatprep.subr.bf16.mxu1 %v6036_v46  ;;  %v5979_v43 = vld [vmem:[#allocation10 + $0x2ec] ss:$28 sps:$4 sm:$0xff]   ;;  %v6106_v46 = vld [vmem:[#allocation14 + $0xc0] ss:$8 sps:$4 sm:$0xff]  }
 0x28b   :  { %3266 = vmatmul.mubr.bf16.vlgmr.msra.gmra.mrb[12].mxu0 %v6837_v1 }
 0x28c   :  { %5471 = vmatmul.mubr.bf16.vlgmr.msra.gmra.mrb[24].mxu1 %v6892_v18  ;;  %3398 = vmatpush1.bf16.msra.mxu0 %v5938_v45  ;;  %v6108_v45 = vld [vmem:[#allocation14 + $0xc4] ss:$8 sps:$4 sm:$0xff]  }
 0x28d   :  { %3429 = vmatprep.mubr.bf16.mxu0 %v6831_v57  ;;  %3399 = vmatprep.subr.bf16.mxu0 %v5943_v47  ;;  %v6052_v57 = vld [vmem:[#allocation14 + $0x30] ss:$8 sps:$4 sm:$0xff]  }
 0x28e   :  { %4655 = vmatpush1.bf16.msra.mxu1 %v6034_v48  ;;  %v5977_v47 = vld [vmem:[#allocation10 + $0x2e8] ss:$28 sps:$4 sm:$0xff]  }
 0x28f   :  { %4656 = vmatprep.subr.bf16.mxu1 %v6042_v44  ;;  %v5982_v48 = vld [vmem:[#allocation10 + $0x324] ss:$28 sps:$4 sm:$0xff]  }
 0x290   :  { %3400 = vmatpush1.bf16.msra.mxu0 %v5941_v62  ;;  %v6114_v62 = vld [vmem:[#allocation14 + $0xd4] ss:$8 sps:$4 sm:$0xff]   ;;  %v6112_v44 = vld [vmem:[#allocation14 + $0xd0] ss:$8 sps:$4 sm:$0xff]  }
 0x291   :  { %3401 = vmatprep.subr.bf16.mxu0 %v5946_v63  ;;  %v5980_v63 = vld [vmem:[#allocation10 + $0x320] ss:$28 sps:$4 sm:$0xff]  }
 0x292   :  { %4657 = vmatpush1.bf16.msra.mxu1 %v6040_v16  ;;  %v5985_v16 = vld [vmem:[#allocation10 + $0x35c] ss:$28 sps:$4 sm:$0xff]  }
 0x293   :  { %4658 = vmatprep.subr.bf16.mxu1 %v6048_v49  ;;  %v6120_v49 = vld [vmem:[#allocation14 + $0xe4] ss:$8 sps:$4 sm:$0xff]  }
 0x294   :  { %3402 = vmatpush1.bf16.msra.mxu0 %v5944_v56  ;;  %v6118_v56 = vld [vmem:[#allocation14 + $0xe0] ss:$8 sps:$4 sm:$0xff]  }
 0x295   :  { %3403 = vmatprep.subr.bf16.mxu0 %v5949_v50  ;;  %v5983_v50 = vld [vmem:[#allocation10 + $0x358] ss:$28 sps:$4 sm:$0xff]  }
 0x296   :  { %4659 = vmatpush1.bf16.msra.mxu1 %v6046_v51  ;;  %v6126_v51 = vld [vmem:[#allocation14 + $0xf4] ss:$8 sps:$4 sm:$0xff]  }
 0x297   :  { %4660 = vmatprep.subr.bf16.mxu1 %v6054_v53  ;;  %v6124_v53 = vld [vmem:[#allocation14 + $0xf0] ss:$8 sps:$4 sm:$0xff]  }
 0x298   :  { %3404 = vmatpush1.bf16.msra.mxu0 %v5947_v52  ;;  %v5988_v52 = vld [vmem:[#allocation10 + $0x394] ss:$28 sps:$4 sm:$0xff]  }
 0x299   :  { %3405 = vmatprep.subr.bf16.mxu0 %v5952_v54  ;;  %v5986_v54 = vld [vmem:[#allocation10 + $0x390] ss:$28 sps:$4 sm:$0xff]  }
 0x29a   :  { %4661 = vmatpush1.bf16.msra.mxu1 %v6052_v57  ;;  %v5991_v57 = vld [vmem:[#allocation10 + $0x3cc] ss:$28 sps:$4 sm:$0xff]  }
 0x29b   :  { %4662 = vmatprep.subr.bf16.mxu1 %v6060_v55  ;;  %v6135_v55 = vld [vmem:[#allocation14 + $0x104] ss:$8 sps:$4 sm:$0xff]  }
 0x29c   :  { %3406 = vmatpush1.bf16.msra.mxu0 %v5950_v2  ;;  %v5989_v2 = vld [vmem:[#allocation10 + $0x3c8] ss:$28 sps:$4 sm:$0xff]  }
 0x29d   :  { %3407 = vmatprep.subr.bf16.mxu0 %v5955_v60  ;;  %v5994_v60 = vld [vmem:[#allocation10 + $0x404] ss:$28 sps:$4 sm:$0xff]  }
 0x29e   :  { %4663 = vmatpush1.bf16.msra.mxu1 %v6058_v6  ;;  %v5992_v6 = vld [vmem:[#allocation10 + $0x400] ss:$28 sps:$4 sm:$0xff]  }
 0x29f   :  { %4664 = vmatprep.subr.bf16.mxu1 %v6066_v11  ;;  %v6000_v11 = vld [vmem:[#allocation10 + $0x474] ss:$28 sps:$4 sm:$0xff]  }
 0x2a0   :  { %3408 = vmatpush1.bf16.msra.mxu0 %v5953_v7  ;;  %v5997_v7 = vld [vmem:[#allocation10 + $0x43c] ss:$28 sps:$4 sm:$0xff]  }
 0x2a1   :  { %3409 = vmatprep.subr.bf16.mxu0 %v5958_v8  ;;  %v5995_v8 = vld [vmem:[#allocation10 + $0x438] ss:$28 sps:$4 sm:$0xff]  }
 0x2a2   :  { %4665 = vmatpush1.bf16.msra.mxu1 %v6064_v13  ;;  %v5998_v13 = vld [vmem:[#allocation10 + $0x470] ss:$28 sps:$4 sm:$0xff]  }
 0x2a3   :  { %4666 = vmatprep.subr.bf16.mxu1 %v6072_v15 }
 0x2a4   :  { %3410 = vmatpush1.bf16.msra.mxu0 %v5956_v10  ;;  %v6001_v10 = vld [vmem:[#allocation10 + $0x4a8] ss:$28 sps:$4 sm:$0xff]  }
 0x2a5   :  { %3411 = vmatprep.subr.bf16.mxu0 %v5961_v14 }
 0x2a6   :  { %4667 = vmatpush1.bf16.msra.mxu1 %v6070_v17  ;;  %v6004_v17 = vld [vmem:[#allocation10 + $0x4e0] ss:$28 sps:$4 sm:$0xff]  }
 0x2a7   :  { %4668 = vmatprep.subr.bf16.mxu1 %v6078_v21 }
 0x2a8   :  { %3412 = vmatpush1.bf16.msra.mxu0 %v5959_v23 }
 0x2a9   :  { %3413 = vmatprep.subr.bf16.mxu0 %v5964_v20  ;;  %v6009_v20 = vld [vmem:[#allocation10 + $0x51c] ss:$28 sps:$4 sm:$0xff]  }
 0x2aa   :  { %4669 = vmatpush1.bf16.msra.mxu1 %v6076_v22  ;;  %v6007_v22 = vld [vmem:[#allocation10 + $0x518] ss:$28 sps:$4 sm:$0xff]  }
 0x2ab   :  { %4670 = vmatprep.subr.bf16.mxu1 %v6084_v26  ;;  %v6015_v26 = vld [vmem:[#allocation10 + $0x58c] ss:$28 sps:$4 sm:$0xff]  }
 0x2ac   :  { %3414 = vmatpush1.bf16.msra.mxu0 %v5962_v24  ;;  %v6012_v24 = vld [vmem:[#allocation10 + $0x554] ss:$28 sps:$4 sm:$0xff]  }
 0x2ad   :  { %3415 = vmatprep.subr.bf16.mxu0 %v5967_v25  ;;  %v6010_v25 = vld [vmem:[#allocation10 + $0x550] ss:$28 sps:$4 sm:$0xff]  }
 0x2ae   :  { %4671 = vmatpush1.bf16.msra.mxu1 %v6082_v27  ;;  %v6013_v27 = vld [vmem:[#allocation10 + $0x588] ss:$28 sps:$4 sm:$0xff]  }
 0x2af   :  { %4672 = vmatprep.subr.bf16.mxu1 %v6090_v31  ;;  %v6021_v31 = vld [vmem:[#allocation10 + $0x5fc] ss:$28 sps:$4 sm:$0xff]  }
 0x2b0   :  { %3416 = vmatpush1.bf16.msra.mxu0 %v5965_v19  ;;  %v6018_v19 = vld [vmem:[#allocation10 + $0x5c4] ss:$28 sps:$4 sm:$0xff]  }
 0x2b1   :  { %3417 = vmatprep.subr.bf16.mxu0 %v5970_v30  ;;  %v6016_v30 = vld [vmem:[#allocation10 + $0x5c0] ss:$28 sps:$4 sm:$0xff]  }
 0x2b2   :  { %4673 = vmatpush1.bf16.msra.mxu1 %v6088_v29  ;;  %v6019_v29 = vld [vmem:[#allocation10 + $0x5f8] ss:$28 sps:$4 sm:$0xff]  }
 0x2b3   :  { %4674 = vmatprep.subr.bf16.mxu1 %v6096_v35  ;;  %v6027_v35 = vld [vmem:[#allocation10 + $0x66c] ss:$28 sps:$4 sm:$0xff]  }
 0x2b4   :  { %3418 = vmatpush1.bf16.msra.mxu0 %v5968_v33  ;;  %v6024_v33 = vld [vmem:[#allocation10 + $0x634] ss:$28 sps:$4 sm:$0xff]  }
 0x2b5   :  { %3419 = vmatprep.subr.bf16.mxu0 %v5973_v34  ;;  %v6022_v34 = vld [vmem:[#allocation10 + $0x630] ss:$28 sps:$4 sm:$0xff]  }
 0x2b6   :  { %4675 = vmatpush1.bf16.msra.mxu1 %v6094_v28  ;;  %v6025_v28 = vld [vmem:[#allocation10 + $0x668] ss:$28 sps:$4 sm:$0xff]  }
 0x2b7   :  { %4676 = vmatprep.subr.bf16.mxu1 %v6102_v38 }
 0x2b8   :  { %3420 = vmatpush1.bf16.msra.mxu0 %v5971_v32  ;;  %v6030_v32 = vld [vmem:[#allocation10 + $0x6a4] ss:$28 sps:$4 sm:$0xff]  }
 0x2b9   :  { %3421 = vmatprep.subr.bf16.mxu0 %v5976_v36 }
 0x2ba   :  { %4677 = vmatpush1.bf16.msra.mxu1 %v6100_v39  ;;  %v6028_v39 = vld [vmem:[#allocation10 + $0x6a0] ss:$28 sps:$4 sm:$0xff]  }
 0x2bb   :  { %4678 = vmatprep.subr.bf16.mxu1 %v6108_v45  ;;  %v6033_v45 = vld [vmem:[#allocation10 + $0x6dc] ss:$28 sps:$4 sm:$0xff]  }
 0x2bc   :  { %3422 = vmatpush1.bf16.msra.mxu0 %v5974_v41 }
 0x2bd   :  { %3423 = vmatprep.subr.bf16.mxu0 %v5979_v43 }
 0x2be   :  { %4679 = vmatpush1.bf16.msra.mxu1 %v6106_v46 }
 0x2bf   :  { %4680 = vmatprep.subr.bf16.mxu1 %v6114_v62  ;;  %v6037_v62 = vld [vmem:[#allocation10 + $0x710] ss:$28 sps:$4 sm:$0xff]  }
 0x2c0   :  { %3424 = vmatpush1.bf16.msra.mxu0 %v5977_v47  ;;  %v6031_v47 = vld [vmem:[#allocation10 + $0x6d8] ss:$28 sps:$4 sm:$0xff]  }
 0x2c1   :  { %3425 = vmatprep.subr.bf16.mxu0 %v5982_v48  ;;  %v6039_v48 = vld [vmem:[#allocation10 + $0x714] ss:$28 sps:$4 sm:$0xff]  }
 0x2c2   :  { %4681 = vmatpush1.bf16.msra.mxu1 %v6112_v44  ;;  %v6045_v44 = vld [vmem:[#allocation10 + $0x74c] ss:$28 sps:$4 sm:$0xff]  }
 0x2c3   :  { %4682 = vmatprep.subr.bf16.mxu1 %v6120_v49  ;;  %v6057_v49 = vld [vmem:[#allocation10 + $0x7bc] ss:$28 sps:$4 sm:$0xff]  }
 0x2c4   :  { %3426 = vmatpush1.bf16.msra.mxu0 %v5980_v63  ;;  %v6043_v63 = vld [vmem:[#allocation10 + $0x748] ss:$28 sps:$4 sm:$0xff]  }
 0x2c5   :  { %3427 = vmatprep.subr.bf16.mxu0 %v5985_v16  ;;  %v6051_v16 = vld [vmem:[#allocation10 + $0x784] ss:$28 sps:$4 sm:$0xff]  }
 0x2c6   :  { %4683 = vmatpush1.bf16.msra.mxu1 %v6118_v56  ;;  %v6049_v56 = vld [vmem:[#allocation10 + $0x780] ss:$28 sps:$4 sm:$0xff]  }
 0x2c7   :  { %4684 = vmatprep.subr.bf16.mxu1 %v6126_v51  ;;  %v6063_v51 = vld [vmem:[#allocation10 + $0x7f4] ss:$28 sps:$4 sm:$0xff]  }
 0x2c8   :  { %3428 = vmatpush1.bf16.msra.mxu0 %v5983_v50  ;;  %v6055_v50 = vld [vmem:[#allocation10 + $0x7b8] ss:$28 sps:$4 sm:$0xff]  }
 0x2c9   :  { %3438 = vmatprep.subr.bf16.mxu0 %v5988_v52  ;;  %v6061_v52 = vld [vmem:[#allocation10 + $0x7f0] ss:$28 sps:$4 sm:$0xff]  }
 0x2ca   :  { %4685 = vmatpush1.bf16.msra.mxu1 %v6124_v53  ;;  %v6069_v53 = vld [vmem:[#allocation10 + $0x82c] ss:$28 sps:$4 sm:$0xff]  }
 0x2cb   :  { %3430 = vmatmul.mubr.bf16.vlgmr.msra.gmra.mrb[16].mxu0 %v6837_v1  ;;  %4695 = vmatprep.subr.bf16.mxu1 %v6135_v55  ;;  %v6003_v1 = vld [vmem:[#allocation10 + $0x4ac] ss:$28 sps:$4 sm:$0xff]  }
 0x2cc   :  { %3439 = vmatpush1.bf16.msra.mxu0 %v5986_v54  ;;  %3470 = vmatprep.mubr.bf16.mxu0 %v6835_v59  ;;  %v6006_v59 = vld [vmem:[#allocation10 + $0x4e4] ss:$28 sps:$4 sm:$0xff]  }
 0x2cd   :  { %3440 = vmatprep.subr.bf16.mxu0 %v5991_v57  ;;  %v6075_v54 = vld [vmem:[#allocation10 + $0x864] ss:$28 sps:$4 sm:$0xff]  }
 0x2d0   :  { %3441 = vmatpush1.bf16.msra.mxu0 %v5989_v2 }
 0x2d1   :  { %3442 = vmatprep.subr.bf16.mxu0 %v5994_v60 }
 0x2d4   :  { %3443 = vmatpush1.bf16.msra.mxu0 %v5992_v6 }
 0x2d5   :  { %3444 = vmatprep.subr.bf16.mxu0 %v5997_v7 }
 0x2d8   :  { %3445 = vmatpush1.bf16.msra.mxu0 %v5995_v8 }
 0x2d9   :  { %3446 = vmatprep.subr.bf16.mxu0 %v6000_v11 }
 0x2dc   :  { %3447 = vmatpush1.bf16.msra.mxu0 %v5998_v13  ;;  %v6073_v13 = vld [vmem:[#allocation10 + $0x860] ss:$28 sps:$4 sm:$0xff]  }
 0x2dd   :  { %3448 = vmatprep.subr.bf16.mxu0 %v6003_v1 }
 0x2df   :  { %v6920_v14 = vpop.f32.mrb[8].mxu1 }
 0x2e0   :  { %v6922_v15 = vpop.f32.mrb[9].mxu1  ;;  %3449 = vmatpush1.bf16.msra.mxu0 %v6001_v10 }
 0x2e1   :  { %v3394_v23 = vpop.f32.mrb[10].mxu1  ;;  %3450 = vmatprep.subr.bf16.mxu0 %v6006_v59 }
 0x2e2   :  { %v3395_v21 = vpop.f32.mrb[11].mxu1 }
 0x2e4   :  { %3451 = vmatpush1.bf16.msra.mxu0 %v6004_v17 }
 0x2e5   :  { %3452 = vmatprep.subr.bf16.mxu0 %v6009_v20  ;;  %v6081_v20 = vld [vmem:[#allocation10 + $0x89c] ss:$28 sps:$4 sm:$0xff]  }
 0x2e8   :  { %3453 = vmatpush1.bf16.msra.mxu0 %v6007_v22 }
 0x2e9   :  { %3454 = vmatprep.subr.bf16.mxu0 %v6012_v24 }
 0x2ec   :  { %3455 = vmatpush1.bf16.msra.mxu0 %v6010_v25 }
 0x2ed   :  { %3456 = vmatprep.subr.bf16.mxu0 %v6015_v26 }
 0x2f0   :  { %3457 = vmatpush1.bf16.msra.mxu0 %v6013_v27 }
 0x2f1   :  { %3458 = vmatprep.subr.bf16.mxu0 %v6018_v19 }
 0x2f4   :  { %3459 = vmatpush1.bf16.msra.mxu0 %v6016_v30 }
 0x2f5   :  { %3460 = vmatprep.subr.bf16.mxu0 %v6021_v31  ;;  %v6079_v31 = vld [vmem:[#allocation10 + $0x898] ss:$28 sps:$4 sm:$0xff]  }
 0x2f8   :  { %3461 = vmatpush1.bf16.msra.mxu0 %v6019_v29 }
 0x2f9   :  { %3462 = vmatprep.subr.bf16.mxu0 %v6024_v33 }
 0x2fc   :  { %3463 = vmatpush1.bf16.msra.mxu0 %v6022_v34  ;;  %v6087_v34 = vld [vmem:[#allocation10 + $0x8d4] ss:$28 sps:$4 sm:$0xff]  }
 0x2fd   :  { %3464 = vmatprep.subr.bf16.mxu0 %v6027_v35 }
 0x2ff   :  { %v5389_v36 = vpop.f32.mrb[12].mxu1 }
 0x300   :  { %v5390_v38 = vpop.f32.mrb[13].mxu1  ;;  %3465 = vmatpush1.bf16.msra.mxu0 %v6025_v28 }
 0x301   :  { %v5391_v41 = vadd.f32 %v5390_v38, %v5389_v36  ;;  %v5392_v43 = vpop.f32.mrb[14].mxu1  ;;  %3466 = vmatprep.subr.bf16.mxu0 %v6030_v32 }
 0x302   :  { %v5393_v46 = vpop.f32.mrb[15].mxu1  ;;  %v6085_v43 = vld [vmem:[#allocation10 + $0x8d0] ss:$28 sps:$4 sm:$0xff]  }
 0x304   :  { %3467 = vmatpush1.bf16.msra.mxu0 %v6028_v39 }
 0x305   :  { %3468 = vmatprep.subr.bf16.mxu0 %v6033_v45 }
 0x308   :  { %3469 = vmatpush1.bf16.msra.mxu0 %v6031_v47 }
 0x309   :  { %3479 = vmatprep.subr.bf16.mxu0 %v6039_v48 }
 0x30b   :  { %3471 = vmatmul.mubr.bf16.vlgmr.msra.gmra.mrb[16].mxu0 %v6833_v58  ;;  %v6067_v58 = vld [vmem:[#allocation10 + $0x828] ss:$28 sps:$4 sm:$0xff]  }
 0x30c   :  { %3480 = vmatpush1.bf16.msra.mxu0 %v6037_v62  ;;  %3511 = vmatprep.mubr.bf16.mxu0 %v6853_v42 }
 0x30d   :  { %3481 = vmatprep.subr.bf16.mxu0 %v6045_v44 }
 0x310   :  { %3482 = vmatpush1.bf16.msra.mxu0 %v6043_v63 }
 0x311   :  { %3483 = vmatprep.subr.bf16.mxu0 %v6051_v16 }
 0x314   :  { %3484 = vmatpush1.bf16.msra.mxu0 %v6049_v56  ;;  %v6091_v56 = vld [vmem:[#allocation10 + $0x908] ss:$28 sps:$4 sm:$0xff]  }
 0x315   :  { %3485 = vmatprep.subr.bf16.mxu0 %v6057_v49 }
 0x318   :  { %3486 = vmatpush1.bf16.msra.mxu0 %v6055_v50 }
 0x319   :  { %3487 = vmatprep.subr.bf16.mxu0 %v6063_v51  ;;  %v6099_v51 = vld [vmem:[#allocation10 + $0x944] ss:$28 sps:$4 sm:$0xff]  }
 0x31c   :  { %3488 = vmatpush1.bf16.msra.mxu0 %v6061_v52 }
 0x31d   :  { %3489 = vmatprep.subr.bf16.mxu0 %v6069_v53 }
 0x31e   :  { %v6926_v42 = vpop.f32.mrb[8].mxu0 }
 0x31f   :  { %v3723_v57 = vrot.slane %v6926_v42, 4  ;;  %v3772_v2 = vmul.f32 %v6926_v42, %v6926_v42  ;;  %v5411_v55 = vpop.f32.mrb[16].mxu1  ;;  %v6931_v60 = vpop.f32.mrb[9].mxu0 }
 0x320   :  { %v3729_v6 = vrot.slane %v6931_v60, 4  ;;  %v3773_v7 = vmul.f32 %v6931_v60, %v6931_v60  ;;  %v5412_v8 = vpop.f32.mrb[17].mxu1  ;;  %v3230_v11 = vpop.f32.mrb[10].mxu0  ;;  %3490 = vmatpush1.bf16.msra.mxu0 %v6067_v58 }
 0x321   :  { %v3724_v1 = vadd.f32 %v3723_v57, %v6926_v42  ;;  %v3779_v10 = vrot.slane %v3772_v2, 4  ;;  %v5413_v59 = vadd.f32 %v5412_v8, %v5411_v55  ;;  %v5414_v17 = vpop.f32.mrb[18].mxu1  ;;  %v3231_v23 = vpop.f32.mrb[11].mxu0  ;;  %3491 = vmatprep.subr.bf16.mxu0 %v6075_v54  ;;  %v6097_v57 = vld [vmem:[#allocation10 + $0x940] ss:$28 sps:$4 sm:$0xff]  }
 0x322   :  { %v3730_v21 = vadd.f32 %v3729_v6, %v6931_v60  ;;  %v3785_v22 = vrot.slane %v3773_v7, 4  ;;  %v5415_v24 = vpop.f32.mrb[19].mxu1  ;;  %v6105_v55 = vld [vmem:[#allocation10 + $0x97c] ss:$28 sps:$4 sm:$0xff]   ;;  %v6111_v8 = vld [vmem:[#allocation10 + $0x9b4] ss:$28 sps:$4 sm:$0xff]  }
 0x323   :  { %v3725_v25 = vrot.slane %v3724_v1, 2  ;;  %v3780_v26 = vadd.f32 %v3779_v10, %v3772_v2  ;;  %v6938_v27 = vadd.f32 %v5413_v59, %v5391_v41  ;;  %v6093_v41 = vld [vmem:[#allocation10 + $0x90c] ss:$28 sps:$4 sm:$0xff]  }
 0x324   :  { %v3731_v19 = vrot.slane %v3730_v21, 2  ;;  %v3786_v30 = vadd.f32 %v3785_v22, %v3773_v7  ;;  %3492 = vmatpush1.bf16.msra.mxu0 %v6073_v13  ;;  %v6103_v7 = vld [vmem:[#allocation10 + $0x978] ss:$28 sps:$4 sm:$0xff]   ;;  %v6109_v11 = vld [vmem:[#allocation10 + $0x9b0] ss:$28 sps:$4 sm:$0xff]   ;;  %v6940_v13 = vld [vmem:[#allocation11] sm:$0xff] }
 0x325   :  { %v3726_v29 = vadd.f32 %v3725_v25, %v3724_v1  ;;  %v3781_v33 = vrot.slane %v3780_v26, 2  ;;  %3493 = vmatprep.subr.bf16.mxu0 %v6081_v20  ;;  %v6117_v1 = vld [vmem:[#allocation10 + $0x9ec] ss:$28 sps:$4 sm:$0xff]   ;;  %v3874_v17 = vrot.slane %v6940_v13, %v6786_v61  ;;  %v6123_v22 = vld [vmem:[#allocation10 + $0xa24] ss:$28 sps:$4 sm:$0xff]   ;;  %v3878_v24 = vrot.slane %v6940_v13, %v6794_v4 }
 0x326   :  { %v3732_v35 = vadd.f32 %v3731_v19, %v3730_v21  ;;  %v3787_v28 = vrot.slane %v3786_v30, 2  ;;  %v6942_v10 = vld [vmem:[#allocation13] sm:$0xff] }
 0x327   :  { %v3727_v32 = vrot.slane %v3726_v29, 1  ;;  %v3782_v36 = vadd.f32 %v3781_v33, %v3780_v26  ;;  %v6115_v23 = vld [vmem:[#allocation10 + $0x9e8] ss:$28 sps:$4 sm:$0xff]   ;;  %v3917_v19 = vrot.slane %v6942_v10, %v6786_v61 }
 0x328   :  { %v3733_v38 = vrot.slane %v3732_v35, 1  ;;  %v3788_v39 = vadd.f32 %v3787_v28, %v3786_v30  ;;  %3494 = vmatpush1.bf16.msra.mxu0 %v6079_v31  ;;  %v3921_v31 = vrot.slane %v6942_v10, %v6794_v4  ;;  %v6129_v28 = vld [vmem:[#allocation10 + $0xa5c] ss:$28 sps:$4 sm:$0xff]  }
 0x329   :  { %v3728_v45 = vadd.f32 %v3727_v32, %v3726_v29  ;;  %v3783_v46 = vrot.slane %v3782_v36, 1  ;;  %3495 = vmatprep.subr.bf16.mxu0 %v6087_v34  ;;  %v6121_v34 = vld [vmem:[#allocation10 + $0xa20] ss:$28 sps:$4 sm:$0xff]  }
 0x32a   :  { %v3734_v47 = vadd.f32 %v3733_v38, %v3732_v35  ;;  %v3789_v48 = vrot.slane %v3788_v39, 1 }
 0x32b   :  { %v3765_v62 = vmul.f32 0.125, %v3728_v45  ;;  %v3784_v44 = vadd.f32 %v3783_v46, %v3782_v36  ;;  %v6127_v45 = vld [vmem:[#allocation10 + $0xa58] ss:$28 sps:$4 sm:$0xff]  }
 0x32c   :  { %v3766_v63 = vmul.f32 0.125, %v3734_v47  ;;  %v3790_v16 = vadd.f32 %v3789_v48, %v3788_v39  ;;  %3496 = vmatpush1.bf16.msra.mxu0 %v6085_v43  ;;  %v6132_v47 = vld [vmem:[#allocation10 + $0xa94] ss:$28 sps:$4 sm:$0xff]  }
 0x32d   :  { %v3821_v49 = vmul.f32 0.125, %v3784_v44  ;;  %v3828_v50 = vmul.f32 %v3765_v62, %v3765_v62  ;;  %3497 = vmatprep.subr.bf16.mxu0 %v6093_v41  ;;  %v3842_v59 = vsub.f32 %v6926_v42, %v3765_v62  ;;  %v6133_v62 = vld [vmem:[#allocation14 + $0x100] ss:$8 sps:$4 sm:$0xff]  }
 0x32e   :  { %v3822_v52 = vmul.f32 0.125, %v3790_v16  ;;  %v3829_v53 = vmul.f32 %v3766_v63, %v3766_v63  ;;  %v3843_v21 = vsub.f32 %v6931_v60, %v3766_v63  ;;  %v6130_v63 = vld [vmem:[#allocation10 + $0xa90] ss:$28 sps:$4 sm:$0xff]  }
 0x32f   :  { %v3835_v58 = vsub.f32 %v3821_v49, %v3828_v50  ;;  %v6141_v16 = vld [vmem:[#allocation14 + $0x114] ss:$8 sps:$4 sm:$0xff]   ;;  %v6147_v50 = vld [vmem:[#allocation14 + $0x124] ss:$8 sps:$4 sm:$0xff]  }
 0x330   :  { %v3836_v54 = vsub.f32 %v3822_v52, %v3829_v53  ;;  %3498 = vmatpush1.bf16.msra.mxu0 %v6091_v56  ;;  %v6138_v56 = vld [vmem:[#allocation10 + $0xacc] ss:$28 sps:$4 sm:$0xff]   ;;  %v6145_v52 = vld [vmem:[#allocation14 + $0x120] ss:$8 sps:$4 sm:$0xff]   ;;  %v6142_v53 = vld [vmem:[#allocation10 + $0xb00] ss:$28 sps:$4 sm:$0xff]  }
 0x331   :  { %v3849_v2 = vadd.f32 1e-05, %v3835_v58  ;;  %3499 = vmatprep.subr.bf16.mxu0 %v6099_v51  ;;  %v6136_v49 = vld [vmem:[#allocation10 + $0xac8] ss:$28 sps:$4 sm:$0xff]  }
 0x332   :  { %v3850_v6 = vadd.f32 1e-05, %v3836_v54  ;;  %v6144_v51 = vld [vmem:[#allocation10 + $0xb04] ss:$28 sps:$4 sm:$0xff]   ;;  %v6150_v54 = vld [vmem:[#allocation10 + $0xb3c] ss:$28 sps:$4 sm:$0xff]  }
 0x333   :  { %6288 = vrsqrt.f32 %v3849_v2  ;;  %v6153_v58 = vld [vmem:[#allocation14 + $0x134] ss:$8 sps:$4 sm:$0xff]   ;;  %v6159_v2 = vld [vmem:[#allocation14 + $0x144] ss:$8 sps:$4 sm:$0xff]  }
 0x334   :  { %6290 = vrsqrt.f32 %v3850_v6  ;;  %3500 = vmatpush1.bf16.msra.mxu0 %v6097_v57  ;;  %v6148_v57 = vld [vmem:[#allocation10 + $0xb38] ss:$28 sps:$4 sm:$0xff]  }
 0x335   :  { %3501 = vmatprep.subr.bf16.mxu0 %v6105_v55  ;;  %v6156_v55 = vld [vmem:[#allocation10 + $0xb74] ss:$28 sps:$4 sm:$0xff]  }
 0x336   :  { %v6157_v6 = vld [vmem:[#allocation14 + $0x140] ss:$8 sps:$4 sm:$0xff]  }
 0x338   :  { %3502 = vmatpush1.bf16.msra.mxu0 %v6103_v7  ;;  %v6154_v7 = vld [vmem:[#allocation10 + $0xb70] ss:$28 sps:$4 sm:$0xff]  }
 0x339   :  { %3503 = vmatprep.subr.bf16.mxu0 %v6111_v8  ;;  %v6165_v8 = vld [vmem:[#allocation14 + $0x154] ss:$8 sps:$4 sm:$0xff]  }
 0x33c   :  { %3504 = vmatpush1.bf16.msra.mxu0 %v6109_v11  ;;  %v6162_v11 = vld [vmem:[#allocation10 + $0xbac] ss:$28 sps:$4 sm:$0xff]  }
 0x33d   :  { %v6289_v20 = vpop.eup %6288  ;;  %3505 = vmatprep.subr.bf16.mxu0 %v6117_v1  ;;  %v6163_v1 = vld [vmem:[#allocation14 + $0x150] ss:$8 sps:$4 sm:$0xff]  }
 0x33e   :  { %v6291_v25 = vpop.eup %6290  ;;  %v3863_v26 = vmul.f32 %v6289_v20, %v3842_v59  ;;  %v6160_v59 = vld [vmem:[#allocation10 + $0xba8] ss:$28 sps:$4 sm:$0xff]  }
 0x33f   :  { %v3864_v30 = vmul.f32 %v6291_v25, %v3843_v21  ;;  %v5433_v42 = vpop.f32.mrb[20].mxu1  ;;  %v6169_v25 = vld [vmem:[#allocation14 + $0x160] ss:$8 sps:$4 sm:$0xff]  }
 0x340   :  { %v3906_v29 = vmul.f32 %v3874_v17, %v3863_v26  ;;  %v5434_v33 = vpop.f32.mrb[21].mxu1  ;;  %3506 = vmatpush1.bf16.msra.mxu0 %v6115_v23  ;;  %v6171_v17 = vld [vmem:[#allocation14 + $0x164] ss:$8 sps:$4 sm:$0xff]   ;;  %v6168_v23 = vld [vmem:[#allocation10 + $0xbe4] ss:$28 sps:$4 sm:$0xff]  }
 0x341   :  { %v5435_v60 = vadd.f32 %v5434_v33, %v5433_v42  ;;  %v5436_v35 = vpop.f32.mrb[22].mxu1  ;;  %3507 = vmatprep.subr.bf16.mxu0 %v6123_v22  ;;  %v3907_v32 = vmul.f32 %v3878_v24, %v3864_v30 }
 0x342   :  { %v5437_v36 = vpop.f32.mrb[23].mxu1  ;;  %v3949_v38 = vadd.f32 %v3917_v19, %v3906_v29  ;;  %v6177_v29 = vld [vmem:[#allocation14 + $0x174] ss:$8 sps:$4 sm:$0xff]   ;;  %v6174_v35 = vld [vmem:[#allocation10 + $0xc1c] ss:$28 sps:$4 sm:$0xff]  }
 0x343   :  { %v3950_v39 = vadd.f32 %v3921_v31, %v3907_v32  ;;  %v6955_v43 = vadd.f32 %v5435_v60, %v6938_v27  ;;  %v6139_v27 = vld [vmem:[#allocation14 + $0x110] ss:$8 sps:$4 sm:$0xff]  }
 0x344   :  { %3508 = vmatpush1.bf16.msra.mxu0 %v6121_v34  ;;  %v3956_v46 = vmax.f32 %v3949_v38, 0.0  ;;  %v6166_v31 = vld [vmem:[#allocation10 + $0xbe0] ss:$28 sps:$4 sm:$0xff]  }
 0x345   :  { %3509 = vmatprep.subr.bf16.mxu0 %v6129_v28  ;;  %v3957_v41 = vmax.f32 %v3950_v39, 0.0  ;;  %v6175_v39 = vld [vmem:[#allocation14 + $0x170] ss:$8 sps:$4 sm:$0xff]  }
 0x346   :  { %v3963_v44 = vpack.c.bf16 %v3956_v46, %v3956_v46  ;;  %v6172_v46 = vld [vmem:[#allocation10 + $0xc18] ss:$28 sps:$4 sm:$0xff]  }
 0x347   :  { %v3964_v48 = vpack.c.bf16 %v3957_v41, %v3957_v41  ;;  %v6180_v41 = vld [vmem:[#allocation14 + $0x184] ss:$8 sps:$4 sm:$0xff]  }
 0x348   :  { %3510 = vmatpush1.bf16.msra.mxu0 %v6127_v45 }
 0x349   :  { %4686 = vmatprep.mubr.bf16.mxu1 %v3964_v48  ;;  %3520 = vmatprep.subr.bf16.mxu0 %v6132_v47 }
 0x34a   :  { %4687 = vmatmul.mubr.bf16.vlgmr.msra.gmra.mrb[28].mxu1 %v3963_v44 }
 0x34b   :  { %3512 = vmatmul.mubr.bf16.vlgmr.msra.gmra.mrb[16].mxu0 %v6877_v5  ;;  %4696 = vmatpush1.bf16.msra.mxu1 %v6133_v62  ;;  %v6151_v5 = vld [vmem:[#allocation14 + $0x130] ss:$8 sps:$4 sm:$0xff]  }
 0x34c   :  { %3521 = vmatpush1.bf16.msra.mxu0 %v6130_v63  ;;  %4697 = vmatprep.subr.bf16.mxu1 %v6141_v16 }
 0x34d   :  { %3522 = vmatprep.subr.bf16.mxu0 %v6138_v56  ;;  %3552 = vmatprep.mubr.bf16.mxu0 %v6555_v0  ;;  %v6178_v56 = vld [vmem:[#allocation14 + $0x180] ss:$8 sps:$4 sm:$0xff]  }
 0x34f   :  { %4698 = vmatpush1.bf16.msra.mxu1 %v6139_v27 }
 0x350   :  { %3523 = vmatpush1.bf16.msra.mxu0 %v6136_v49  ;;  %4699 = vmatprep.subr.bf16.mxu1 %v6147_v50  ;;  %v6183_v50 = vld [vmem:[#allocation14 + $0x194] ss:$8 sps:$4 sm:$0xff]  }
 0x351   :  { %3524 = vmatprep.subr.bf16.mxu0 %v6144_v51 }
 0x353   :  { %4700 = vmatpush1.bf16.msra.mxu1 %v6145_v52 }
 0x354   :  { %3525 = vmatpush1.bf16.msra.mxu0 %v6142_v53  ;;  %4701 = vmatprep.subr.bf16.mxu1 %v6153_v58 }
 0x355   :  { %3526 = vmatprep.subr.bf16.mxu0 %v6150_v54 }
 0x357   :  { %4702 = vmatpush1.bf16.msra.mxu1 %v6151_v5 }
 0x358   :  { %3527 = vmatpush1.bf16.msra.mxu0 %v6148_v57  ;;  %4703 = vmatprep.subr.bf16.mxu1 %v6159_v2  ;;  %v6181_v57 = vld [vmem:[#allocation14 + $0x190] ss:$8 sps:$4 sm:$0xff]  }
 0x359   :  { %3528 = vmatprep.subr.bf16.mxu0 %v6156_v55 }
 0x35b   :  { %4704 = vmatpush1.bf16.msra.mxu1 %v6157_v6  ;;  %v6186_v6 = vld [vmem:[#allocation14 + $0x1a4] ss:$8 sps:$4 sm:$0xff]  }
 0x35c   :  { %3529 = vmatpush1.bf16.msra.mxu0 %v6154_v7  ;;  %4705 = vmatprep.subr.bf16.mxu1 %v6165_v8 }
 0x35d   :  { %3530 = vmatprep.subr.bf16.mxu0 %v6162_v11 }
 0x35e   :  { %v3267_v20 = vpop.f32.mrb[12].mxu0 }
 0x35f   :  { %v6960_v21 = vadd.f32 %v6920_v14, %v3267_v20  ;;  %v3715_v22 = vpop.f32.mrb[24].mxu1  ;;  %v3269_v24 = vpop.f32.mrb[13].mxu0  ;;  %4706 = vmatpush1.bf16.msra.mxu1 %v6163_v1 }
 0x360   :  { %v6963_v26 = vadd.f32 %v3715_v22, %v6955_v43  ;;  %v6966_v19 = vadd.f32 %v6922_v15, %v3269_v24  ;;  %v5472_v30 = vpop.f32.mrb[25].mxu1  ;;  %v3271_v42 = vpop.f32.mrb[14].mxu0  ;;  %3531 = vmatpush1.bf16.msra.mxu0 %v6160_v59  ;;  %4707 = vmatprep.subr.bf16.mxu1 %v6171_v17  ;;  %v6189_v22 = vld [vmem:[#allocation14 + $0x1b4] ss:$8 sps:$4 sm:$0xff]  }
 0x361   :  { %v3735_v33 = vrot.slane %v6960_v21, 4  ;;  %v3774_v14 = vmul.f32 %v6960_v21, %v6960_v21  ;;  %v3718_v34 = vpop.f32.mrb[26].mxu1  ;;  %v3272_v60 = vpop.f32.mrb[15].mxu0  ;;  %3532 = vmatprep.subr.bf16.mxu0 %v6168_v23  ;;  %v6184_v23 = vld [vmem:[#allocation14 + $0x1a0] ss:$8 sps:$4 sm:$0xff]  }
 0x362   :  { %v3741_v28 = vrot.slane %v6966_v19, 4  ;;  %v3775_v15 = vmul.f32 %v6966_v19, %v6966_v19  ;;  %v5473_v32 = vpop.f32.mrb[27].mxu1  ;;  %v6187_v42 = vld [vmem:[#allocation14 + $0x1b0] ss:$8 sps:$4 sm:$0xff]   ;;  %v6198_v60 = vld [vmem:[#allocation14 + $0x1e4] ss:$8 sps:$4 sm:$0xff]  }
 0x363   :  { %v3736_v36 = vadd.f32 %v6960_v21, %v3735_v33  ;;  %v3791_v38 = vrot.slane %v3774_v14, 4  ;;  %4708 = vmatpush1.bf16.msra.mxu1 %v6169_v25  ;;  %v6190_v33 = vld [vmem:[#allocation14 + $0x1c0] ss:$8 sps:$4 sm:$0xff]   ;;  %v6193_v34 = vld [vmem:[#allocation14 + $0x1d0] ss:$8 sps:$4 sm:$0xff]  }
 0x364   :  { %v3742_v43 = vadd.f32 %v6966_v19, %v3741_v28  ;;  %v3797_v45 = vrot.slane %v3775_v15, 4  ;;  %3533 = vmatpush1.bf16.msra.mxu0 %v6166_v31  ;;  %4709 = vmatprep.subr.bf16.mxu1 %v6177_v29  ;;  %v6192_v31 = vld [vmem:[#allocation14 + $0x1c4] ss:$8 sps:$4 sm:$0xff]   ;;  %v3882_v28 = vrot.slane %v6940_v13, %v6791_v3  ;;  %v6196_v32 = vld [vmem:[#allocation14 + $0x1e0] ss:$8 sps:$4 sm:$0xff]  }
 0x365   :  { %v3737_v47 = vrot.slane %v3736_v36, 2  ;;  %v3792_v48 = vadd.f32 %v3791_v38, %v3774_v14  ;;  %3534 = vmatprep.subr.bf16.mxu0 %v6174_v35  ;;  %v6195_v14 = vld [vmem:[#allocation14 + $0x1d4] ss:$8 sps:$4 sm:$0xff]  }
 0x366   :  { %v3743_v62 = vrot.slane %v3742_v43, 2  ;;  %v3798_v44 = vadd.f32 %v3797_v45, %v3775_v15  ;;  %v3925_v45 = vrot.slane %v6942_v10, %v6791_v3 }
 0x367   :  { %v3738_v63 = vadd.f32 %v3737_v47, %v3736_v36  ;;  %v3793_v16 = vrot.slane %v3792_v48, 2  ;;  %4710 = vmatpush1.bf16.msra.mxu1 %v6175_v39  ;;  %v6201_v39 = vld [vmem:[#allocation14 + $0x1f4] ss:$8 sps:$4 sm:$0xff]  }
 0x368   :  { %v3744_v27 = vadd.f32 %v3743_v62, %v3742_v43  ;;  %v3799_v49 = vrot.slane %v3798_v44, 2  ;;  %3535 = vmatpush1.bf16.msra.mxu0 %v6172_v46  ;;  %4711 = vmatprep.subr.bf16.mxu1 %v6180_v41  ;;  %v3886_v43 = vrot.slane %v6940_v13, %v6798_v9 }
 0x369   :  { %v3739_v51 = vrot.slane %v3738_v63, 1  ;;  %v3794_v52 = vadd.f32 %v3793_v16, %v3792_v48  ;;  %v6199_v48 = vld [vmem:[#allocation14 + $0x1f0] ss:$8 sps:$4 sm:$0xff]  }
 0x36a   :  { %v3745_v53 = vrot.slane %v3744_v27, 1  ;;  %v3800_v58 = vadd.f32 %v3799_v49, %v3798_v44  ;;  %v6202_v49 = vld [vmem:[#allocation14 + $0x200] ss:$8 sps:$4 sm:$0xff]  }
 0x36b   :  { %v3740_v54 = vadd.f32 %v3739_v51, %v3738_v63  ;;  %v3795_v5 = vrot.slane %v3794_v52, 1  ;;  %3553 = vmatmul.mubr.bf16.vlgmr.msra.gmra.mrb[16].mxu0 %v6892_v18  ;;  %4712 = vmatpush1.bf16.msra.mxu1 %v6178_v56  ;;  %v6210_v51 = vld [vmem:[#allocation14 + $0x224] ss:$8 sps:$4 sm:$0xff]  }
 0x36c   :  { %v3746_v2 = vadd.f32 %v3745_v53, %v3744_v27  ;;  %v3801_v55 = vrot.slane %v3800_v58, 1  ;;  %4713 = vmatprep.subr.bf16.mxu1 %v6183_v50  ;;  %v6207_v50 = vld [vmem:[#allocation14 + $0x214] ss:$8 sps:$4 sm:$0xff]  }
 0x36d   :  { %v3767_v7 = vmul.f32 0.125, %v3740_v54  ;;  %v3796_v8 = vadd.f32 %v3795_v5, %v3794_v52  ;;  %v6208_v52 = vld [vmem:[#allocation14 + $0x220] ss:$8 sps:$4 sm:$0xff]   ;;  %v6213_v53 = vld [vmem:[#allocation14 + $0x234] ss:$8 sps:$4 sm:$0xff]  }
 0x36e   :  { %v3768_v11 = vmul.f32 0.125, %v3746_v2  ;;  %v3802_v1 = vadd.f32 %v3801_v55, %v3800_v58  ;;  %v6211_v58 = vld [vmem:[#allocation14 + $0x230] ss:$8 sps:$4 sm:$0xff]   ;;  %v6216_v54 = vld [vmem:[#allocation14 + $0x244] ss:$8 sps:$4 sm:$0xff]  }
 0x36f   :  { %v3823_v59 = vmul.f32 0.125, %v3796_v8  ;;  %v3830_v17 = vmul.f32 %v3767_v7, %v3767_v7  ;;  %4714 = vmatpush1.bf16.msra.mxu1 %v6181_v57  ;;  %v3844_v35 = vsub.f32 %v6960_v21, %v3767_v7  ;;  %v3929_v21 = vrot.slane %v6942_v10, %v6798_v9  ;;  %v6205_v9 = vld [vmem:[#allocation14 + $0x210] ss:$8 sps:$4 sm:$0xff]   ;;  %v6214_v5 = vld [vmem:[#allocation14 + $0x240] ss:$8 sps:$4 sm:$0xff]  }
 0x370   :  { %v3824_v20 = vmul.f32 0.125, %v3802_v1  ;;  %4715 = vmatprep.subr.bf16.mxu1 %v6186_v6  ;;  %v3831_v25 = vmul.f32 %v3768_v11, %v3768_v11  ;;  %v3845_v38 = vsub.f32 %v6966_v19, %v3768_v11  ;;  %v6204_v19 = vld [vmem:[#allocation14 + $0x204] ss:$8 sps:$4 sm:$0xff]   ;;  %v6219_v57 = vld [vmem:[#allocation14 + $0x254] ss:$8 sps:$4 sm:$0xff]  }
 0x371   :  { %v3837_v24 = vsub.f32 %v3823_v59, %v3830_v17  ;;  %v6217_v2 = vld [vmem:[#allocation14 + $0x250] ss:$8 sps:$4 sm:$0xff]   ;;  %v6222_v55 = vld [vmem:[#allocation14 + $0x264] ss:$8 sps:$4 sm:$0xff]   ;;  %v6220_v6 = vld [vmem:[#allocation14 + $0x260] ss:$8 sps:$4 sm:$0xff]  }
 0x372   :  { %v3838_v30 = vsub.f32 %v3824_v20, %v3831_v25  ;;  %v6225_v7 = vld [vmem:[#allocation14 + $0x274] ss:$8 sps:$4 sm:$0xff]   ;;  %v6223_v8 = vld [vmem:[#allocation14 + $0x270] ss:$8 sps:$4 sm:$0xff]   ;;  %v6228_v11 = vld [vmem:[#allocation14 + $0x284] ss:$8 sps:$4 sm:$0xff]  }
 0x373   :  { %v3851_v18 = vadd.f32 1e-05, %v3837_v24  ;;  %4716 = vmatpush1.bf16.msra.mxu1 %v6184_v23  ;;  %v6226_v1 = vld [vmem:[#allocation14 + $0x280] ss:$8 sps:$4 sm:$0xff]   ;;  %v6231_v59 = vld [vmem:[#allocation14 + $0x294] ss:$8 sps:$4 sm:$0xff]  }
 0x374   :  { %4717 = vmatprep.subr.bf16.mxu1 %v6189_v22  ;;  %v3852_v29 = vadd.f32 1e-05, %v3838_v30  ;;  %v6229_v17 = vld [vmem:[#allocation14 + $0x290] ss:$8 sps:$4 sm:$0xff]   ;;  %v6234_v23 = vld [vmem:[#allocation14 + $0x2a4] ss:$8 sps:$4 sm:$0xff]  }
 0x375   :  { %6292 = vrsqrt.f32 %v3851_v18  ;;  %v6232_v20 = vld [vmem:[#allocation14 + $0x2a0] ss:$8 sps:$4 sm:$0xff]   ;;  %v6237_v22 = vld [vmem:[#allocation14 + $0x2b4] ss:$8 sps:$4 sm:$0xff]   ;;  %v6235_v24 = vld [vmem:[#allocation14 + $0x2b0] ss:$8 sps:$4 sm:$0xff]  }
 0x376   :  { %6294 = vrsqrt.f32 %v3852_v29  ;;  %v6240_v25 = vld [vmem:[#allocation14 + $0x2c4] ss:$8 sps:$4 sm:$0xff]   ;;  %v6238_v18 = vld [vmem:[#allocation14 + $0x2c0] ss:$8 sps:$4 sm:$0xff]   ;;  %v6243_v30 = vld [vmem:[#allocation14 + $0x2d4] ss:$8 sps:$4 sm:$0xff]  }
 0x377   :  { %4718 = vmatpush1.bf16.msra.mxu1 %v6187_v42  ;;  %v6241_v42 = vld [vmem:[#allocation14 + $0x2d0] ss:$8 sps:$4 sm:$0xff]   ;;  %v6246_v29 = vld [vmem:[#allocation14 + $0x2e4] ss:$8 sps:$4 sm:$0xff]  }
 0x378   :  { %4719 = vmatprep.subr.bf16.mxu1 %v6192_v31  ;;  %v6244_v31 = vld [vmem:[#allocation14 + $0x2e0] ss:$8 sps:$4 sm:$0xff]  }
 0x37b   :  { %4720 = vmatpush1.bf16.msra.mxu1 %v6190_v33  ;;  %v6249_v33 = vld [vmem:[#allocation14 + $0x2f4] ss:$8 sps:$4 sm:$0xff]  }
 0x37c   :  { %4721 = vmatprep.subr.bf16.mxu1 %v6195_v14  ;;  %v6247_v14 = vld [vmem:[#allocation14 + $0x2f0] ss:$8 sps:$4 sm:$0xff]  }
 0x37f   :  { %v6293_v15 = vpop.eup %6292  ;;  %4722 = vmatpush1.bf16.msra.mxu1 %v6193_v34  ;;  %v6252_v34 = vld [vmem:[#allocation14 + $0x304] ss:$8 sps:$4 sm:$0xff]  }
 0x380   :  { %v3865_v36 = vmul.f32 %v6293_v15, %v3844_v35  ;;  %4723 = vmatprep.subr.bf16.mxu1 %v6198_v60  ;;  %v6295_v46 = vpop.eup %6294 }
 0x381   :  { %v3866_v41 = vmul.f32 %v6295_v46, %v3845_v38 }
 0x382   :  { %v3908_v47 = vmul.f32 %v3882_v28, %v3865_v36 }
 0x383   :  { %4724 = vmatpush1.bf16.msra.mxu1 %v6196_v32  ;;  %v3909_v62 = vmul.f32 %v3886_v43, %v3866_v41 }
 0x384   :  { %4725 = vmatprep.subr.bf16.mxu1 %v6201_v39  ;;  %v3951_v44 = vadd.f32 %v3925_v45, %v3908_v47  ;;  %v3778_v47 = vmul.f32 %v6963_v26, %v6963_v26 }
 0x385   :  { %v3952_v63 = vadd.f32 %v3929_v21, %v3909_v62  ;;  %v3759_v21 = vrot.slane %v6963_v26, 4 }
 0x386   :  { %v3958_v16 = vmax.f32 %v3951_v44, 0.0 }
 0x387   :  { %4726 = vmatpush1.bf16.msra.mxu1 %v6199_v48  ;;  %v3959_v56 = vmax.f32 %v3952_v63, 0.0 }
 0x388   :  { %4736 = vmatprep.subr.bf16.mxu1 %v6204_v19  ;;  %v3965_v3 = vpack.c.bf16 %v3958_v16, %v3958_v16 }
 0x389   :  { %v3966_v27 = vpack.c.bf16 %v3959_v56, %v3959_v56 }
 0x38b   :  { %4727 = vmatprep.mubr.bf16.mxu1 %v3966_v27 }
 0x38c   :  { %4728 = vmatmul.mubr.bf16.vlgmr.msra.gmra.mrb[28].mxu1 %v3965_v3  ;;  %v3815_v3 = vrot.slane %v3778_v47, 4 }
 0x38d   :  { %4737 = vmatpush1.bf16.msra.mxu1 %v6202_v49  ;;  %v3760_v49 = vadd.f32 %v3759_v21, %v6963_v26 }
 0x38e   :  { %4738 = vmatprep.subr.bf16.mxu1 %v6207_v50 }
 0x391   :  { %4739 = vmatpush1.bf16.msra.mxu1 %v6205_v9 }
 0x392   :  { %4740 = vmatprep.subr.bf16.mxu1 %v6210_v51 }
 0x395   :  { %4741 = vmatpush1.bf16.msra.mxu1 %v6208_v52 }
 0x396   :  { %4742 = vmatprep.subr.bf16.mxu1 %v6213_v53 }
 0x399   :  { %4743 = vmatpush1.bf16.msra.mxu1 %v6211_v58 }
 0x39a   :  { %4744 = vmatprep.subr.bf16.mxu1 %v6216_v54 }
 0x39d   :  { %4745 = vmatpush1.bf16.msra.mxu1 %v6214_v5 }
 0x39e   :  { %4746 = vmatprep.subr.bf16.mxu1 %v6219_v57  ;;  %v3761_v57 = vrot.slane %v3760_v49, 2 }
 0x3a1   :  { %4747 = vmatpush1.bf16.msra.mxu1 %v6217_v2  ;;  %v3816_v2 = vadd.f32 %v3815_v3, %v3778_v47  ;;  %v6256_v3 = vld [vmem:[#allocation14 + $0x320] ss:$8 sps:$4 sm:$0xff]  }
 0x3a2   :  { %4748 = vmatprep.subr.bf16.mxu1 %v6222_v55 }
 0x3a5   :  { %4749 = vmatpush1.bf16.msra.mxu1 %v6220_v6 }
 0x3a6   :  { %4750 = vmatprep.subr.bf16.mxu1 %v6225_v7 }
 0x3a9   :  { %4751 = vmatpush1.bf16.msra.mxu1 %v6223_v8 }
 0x3aa   :  { %4752 = vmatprep.subr.bf16.mxu1 %v6228_v11 }
 0x3ad   :  { %4753 = vmatpush1.bf16.msra.mxu1 %v6226_v1 }
 0x3ae   :  { %4754 = vmatprep.subr.bf16.mxu1 %v6231_v59 }
 0x3b1   :  { %4755 = vmatpush1.bf16.msra.mxu1 %v6229_v17 }
 0x3b2   :  { %4756 = vmatprep.subr.bf16.mxu1 %v6234_v23  ;;  %v3762_v23 = vadd.f32 %v3761_v57, %v3760_v49  ;;  %v6255_v49 = vld [vmem:[#allocation14 + $0x314] ss:$8 sps:$4 sm:$0xff]   ;;  %v6265_v57 = vld [vmem:[#allocation14 + $0x350] ss:$8 sps:$4 sm:$0xff]  }
 0x3b5   :  { %4757 = vmatpush1.bf16.msra.mxu1 %v6232_v20  ;;  %v3817_v20 = vrot.slane %v3816_v2, 2 }
 0x3b6   :  { %4758 = vmatprep.subr.bf16.mxu1 %v6237_v22 }
 0x3b9   :  { %4759 = vmatpush1.bf16.msra.mxu1 %v6235_v24 }
 0x3ba   :  { %4760 = vmatprep.subr.bf16.mxu1 %v6240_v25 }
 0x3bd   :  { %4761 = vmatpush1.bf16.msra.mxu1 %v6238_v18 }
 0x3be   :  { %4762 = vmatprep.subr.bf16.mxu1 %v6243_v30  ;;  %v3763_v30 = vrot.slane %v3762_v23, 1 }
 0x3c1   :  { %4763 = vmatpush1.bf16.msra.mxu1 %v6241_v42  ;;  %v3818_v42 = vadd.f32 %v3817_v20, %v3816_v2  ;;  %v6270_v2 = vld [vmem:[#allocation14 + $0x364] ss:$8 sps:$4 sm:$0xff]  }
 0x3c2   :  { %4764 = vmatprep.subr.bf16.mxu1 %v6246_v29 }
 0x3c3   :  { %v3819_v29 = vrot.slane %v3818_v42, 1 }
 0x3c5   :  { %4765 = vmatpush1.bf16.msra.mxu1 %v6244_v31  ;;  %v3764_v31 = vadd.f32 %v3763_v30, %v3762_v23 }
 0x3c6   :  { %4766 = vmatprep.subr.bf16.mxu1 %v6249_v33 }
 0x3c7   :  { %v3771_v33 = vmul.f32 0.125, %v3764_v31 }
 0x3c9   :  { %4767 = vmatpush1.bf16.msra.mxu1 %v6247_v14  ;;  %v3820_v14 = vadd.f32 %v3819_v29, %v3818_v42 }
 0x3ca   :  { %4777 = vmatprep.subr.bf16.mxu1 %v6252_v34 }
 0x43e   :  { %v6987_v60 = vpop.f32.mrb[16].mxu0 }
 0x43f   :  { %v3747_v35 = vrot.slane %v6987_v60, 4  ;;  %v3776_v28 = vmul.f32 %v6987_v60, %v6987_v60  ;;  %v6992_v15 = vpop.f32.mrb[17].mxu0 }
 0x440   :  { %v3753_v32 = vrot.slane %v6992_v15, 4  ;;  %v3777_v36 = vmul.f32 %v6992_v15, %v6992_v15  ;;  %v3558_v38 = vpop.f32.mrb[18].mxu0 }
 0x441   :  { %v3748_v39 = vadd.f32 %v3747_v35, %v6987_v60  ;;  %v3803_v43 = vrot.slane %v3776_v28, 4  ;;  %v3559_v45 = vpop.f32.mrb[19].mxu0  ;;  %v3890_v35 = vrot.slane %v6940_v13, %v6867_v37 }
 0x442   :  { %v3754_v46 = vadd.f32 %v3753_v32, %v6992_v15  ;;  %v3809_v41 = vrot.slane %v3777_v36, 4  ;;  %v3827_v45 = vmul.f32 0.125, %v3820_v14 }
 0x443   :  { %v3749_v48 = vrot.slane %v3748_v39, 2  ;;  %v3804_v62 = vadd.f32 %v3803_v43, %v3776_v28  ;;  %v3933_v43 = vrot.slane %v6942_v10, %v6867_v37  ;;  %v6253_v37 = vld [vmem:[#allocation14 + $0x310] ss:$8 sps:$4 sm:$0xff]  }
 0x444   :  { %v3755_v44 = vrot.slane %v3754_v46, 2  ;;  %v3810_v19 = vadd.f32 %v3809_v41, %v3777_v36  ;;  %v3894_v36 = vrot.slane %v6940_v13, %v6843_v12 }
 0x445   :  { %v3750_v63 = vadd.f32 %v3749_v48, %v3748_v39  ;;  %v3805_v16 = vrot.slane %v3804_v62, 2 }
 0x446   :  { %v3756_v56 = vadd.f32 %v3755_v44, %v3754_v46  ;;  %v3811_v27 = vrot.slane %v3810_v19, 2  ;;  %v3834_v46 = vmul.f32 %v3771_v33, %v3771_v33 }
 0x447   :  { %v3751_v50 = vrot.slane %v3750_v63, 1  ;;  %v3806_v9 = vadd.f32 %v3805_v16, %v3804_v62 }
 0x448   :  { %v3757_v51 = vrot.slane %v3756_v56, 1  ;;  %v3812_v52 = vadd.f32 %v3811_v27, %v3810_v19  ;;  %v3841_v62 = vsub.f32 %v3827_v45, %v3834_v46 }
 0x449   :  { %v3752_v53 = vadd.f32 %v3751_v50, %v3750_v63  ;;  %v3807_v58 = vrot.slane %v3806_v9, 1  ;;  %v6261_v50 = vld [vmem:[#allocation14 + $0x334] ss:$8 sps:$4 sm:$0xff]  }
 0x44a   :  { %v3758_v54 = vadd.f32 %v3757_v51, %v3756_v56  ;;  %v3813_v5 = vrot.slane %v3812_v52, 1  ;;  %v3855_v63 = vadd.f32 1e-05, %v3841_v62  ;;  %v6250_v56 = vld [vmem:[#allocation14 + $0x300] ss:$8 sps:$4 sm:$0xff]  }
 0x44b   :  { %v3769_v55 = vmul.f32 0.125, %v3752_v53  ;;  %v3808_v6 = vadd.f32 %v3807_v58, %v3806_v9  ;;  %v6259_v9 = vld [vmem:[#allocation14 + $0x330] ss:$8 sps:$4 sm:$0xff]   ;;  %v6264_v51 = vld [vmem:[#allocation14 + $0x344] ss:$8 sps:$4 sm:$0xff]   ;;  %v3848_v53 = vsub.f32 %v6963_v26, %v3771_v33 }
 0x44c   :  { %v3770_v7 = vmul.f32 0.125, %v3758_v54  ;;  %v3814_v8 = vadd.f32 %v3813_v5, %v3812_v52  ;;  %v6262_v58 = vld [vmem:[#allocation14 + $0x340] ss:$8 sps:$4 sm:$0xff]   ;;  %v6267_v5 = vld [vmem:[#allocation14 + $0x354] ss:$8 sps:$4 sm:$0xff]  }
 0x44d   :  { %v3825_v11 = vmul.f32 0.125, %v3808_v6  ;;  %v3832_v1 = vmul.f32 %v3769_v55, %v3769_v55  ;;  %v3846_v34 = vsub.f32 %v6987_v60, %v3769_v55  ;;  %v3937_v60 = vrot.slane %v6942_v10, %v6843_v12  ;;  %v6258_v12 = vld [vmem:[#allocation14 + $0x324] ss:$8 sps:$4 sm:$0xff]   ;;  %v6273_v26 = vld [vmem:[#allocation14 + $0x374] ss:$8 sps:$4 sm:$0xff]  }
 0x44e   :  { %v3826_v59 = vmul.f32 0.125, %v3814_v8  ;;  %v3833_v17 = vmul.f32 %v3770_v7, %v3770_v7  ;;  %v3847_v32 = vsub.f32 %v6992_v15, %v3770_v7  ;;  %v3941_v6 = vrot.slane %v6942_v10, %v6886_v40  ;;  %v6268_v7 = vld [vmem:[#allocation14 + $0x360] ss:$8 sps:$4 sm:$0xff]  }
 0x44f   :  { %v3839_v22 = vsub.f32 %v3825_v11, %v3832_v1  ;;  %v6271_v11 = vld [vmem:[#allocation14 + $0x370] ss:$8 sps:$4 sm:$0xff]  }
 0x450   :  { %v3840_v24 = vsub.f32 %v3826_v59, %v3833_v17 }
 0x451   :  { %v3853_v25 = vadd.f32 1e-05, %v3839_v22 }
 0x452   :  { %v3854_v18 = vadd.f32 1e-05, %v3840_v24 }
 0x453   :  { %6296 = vrsqrt.f32 %v3853_v25 }
 0x454   :  { %6298 = vrsqrt.f32 %v3854_v18 }
 0x455   :  { %6300 = vrsqrt.f32 %v3855_v63 }
 0x45d   :  { %v6297_v28 = vpop.eup %6296 }
 0x45e   :  { %v6299_v38 = vpop.eup %6298  ;;  %v3867_v39 = vmul.f32 %v6297_v28, %v3846_v34 }
 0x45f   :  { %v3868_v41 = vmul.f32 %v6299_v38, %v3847_v32  ;;  %v6301_v52 = vpop.eup %6300 }
 0x460   :  { %v3910_v21 = vmul.f32 %v3890_v35, %v3867_v39  ;;  %v3869_v54 = vmul.f32 %v6301_v52, %v3848_v53 }
 0x461   :  { %v3911_v47 = vmul.f32 %v3894_v36, %v3868_v41 }
 0x462   :  { %v3953_v48 = vadd.f32 %v3933_v43, %v3910_v21 }
 0x463   :  { %v3954_v44 = vadd.f32 %v3937_v60, %v3911_v47 }
 0x464   :  { %v3960_v15 = vmax.f32 %v3953_v48, 0.0 }
 0x465   :  { %v3961_v19 = vmax.f32 %v3954_v44, 0.0 }
 0x466   :  { %v3967_v27 = vpack.c.bf16 %v3960_v15, %v3960_v15 }
 0x467   :  { %v3968_v16 = vpack.c.bf16 %v3961_v19, %v3961_v19 }
 0x469   :  { %4768 = vmatprep.mubr.bf16.mxu1 %v3968_v16 }
 0x46a   :  { %4769 = vmatmul.mubr.bf16.vlgmr.msra.gmra.mrb[28].mxu1 %v3967_v27 }
 0x46b   :  { %4778 = vmatpush1.bf16.msra.mxu1 %v6250_v56  ;;  %4809 = vmatprep.mubr.bf16.mxu1 %v6555_v0  ;;  %v3898_v0 = vrot.slane %v6940_v13, %v6886_v40  ;;  %v4082_v13 = vld [vmem:[#allocation16] sm:$0x3] }
 0x46c   :  { %4779 = vmatprep.subr.bf16.mxu1 %v6255_v49  ;;  %v4087_v17 = vrot.slane %v4082_v13, %v6786_v61  ;;  %v4091_v23 = vrot.slane %v4082_v13, %v6794_v4 }
 0x46d   :  { %v3912_v55 = vmul.f32 %v3898_v0, %v3869_v54 }
 0x46f   :  { %4780 = vmatpush1.bf16.msra.mxu1 %v6253_v37  ;;  %v3955_v8 = vadd.f32 %v3941_v6, %v3912_v55 }
 0x470   :  { %4781 = vmatprep.subr.bf16.mxu1 %v6258_v12 }
 0x471   :  { %v3962_v1 = vmax.f32 %v3955_v8, 0.0 }
 0x473   :  { %4782 = vmatpush1.bf16.msra.mxu1 %v6256_v3  ;;  %v3969_v59 = vpack.c.bf16 %v3962_v1, %v3962_v1 }
 0x474   :  { %4783 = vmatprep.subr.bf16.mxu1 %v6261_v50 }
 0x477   :  { %4784 = vmatpush1.bf16.msra.mxu1 %v6259_v9 }
 0x478   :  { %4785 = vmatprep.subr.bf16.mxu1 %v6264_v51 }
 0x47b   :  { %4786 = vmatpush1.bf16.msra.mxu1 %v6262_v58 }
 0x47c   :  { %4787 = vmatprep.subr.bf16.mxu1 %v6267_v5 }
 0x47f   :  { %4788 = vmatpush1.bf16.msra.mxu1 %v6265_v57 }
 0x480   :  { %4789 = vmatprep.subr.bf16.mxu1 %v6270_v2 }
 0x483   :  { %4790 = vmatpush1.bf16.msra.mxu1 %v6268_v7 }
 0x484   :  { %4791 = vmatprep.subr.bf16.mxu1 %v6273_v26 }
 0x487   :  { %4792 = vmatpush1.bf16.msra.mxu1 %v6271_v11 }
 0x48a   :  { %4810 = vmatmul.mubr.bf16.vlgmr.msra.gmra.mrb[28].mxu1 %v3969_v59 }
 0x55d   :  { %v4811_v20 = vpop.f32.mrb[28].mxu1 }
 0x55e   :  { %v5476_v22 = vadd.f32 %v4811_v20, %v4087_v17  ;;  %v4813_v40 = vpop.f32.mrb[29].mxu1 }
 0x55f   :  { %v5477_v10 = vadd.f32 %v4813_v40, %v4091_v23  ;;  %v4815_v24 = vpop.f32.mrb[30].mxu1 }
 0x560   :  { %v5369_v25 = vmul.f32 -1.442695, %v5476_v22  ;;  %v4816_v18 = vpop.f32.mrb[31].mxu1 }
 0x561   :  { %v5370_v30 = vmul.f32 -1.442695, %v5477_v10 }
 0x562   :  { %6302 = vpow2.f32 %v5369_v25 }
 0x563   :  { %6304 = vpow2.f32 %v5370_v30 }
 0x56c   :  { %v6303_v42 = vpop.eup %6302 }
 0x56d   :  { %v6305_v31 = vpop.eup %6304  ;;  %v4824_v29 = vadd.f32 1.0, %v6303_v42 }
 0x56e   :  { %v4825_v33 = vadd.f32 1.0, %v6305_v31 }
 0x56f   :  { %6306 = vrcp.f32 %v4824_v29 }
 0x570   :  { %6308 = vrcp.f32 %v4825_v33 }
 0x579   :  { %v6307_v61 = vpop.eup %6306 }
 0x57a   :  { %v6309_v4 = vpop.eup %6308  ;;  %4830 = vst [vmem:[#allocation17] sm:$0xff] %v6307_v61 }
 0x57b   :  { %4831 = vst [vmem:[#allocation17 + $0x8] sm:$0xff] %v6309_v4 }
 0x57c   :  { %6519 = shalt.err (!%p6516_p6)
}
 0x57d   :  { %s6520_s16 = scalar_lea.hbm %s7042_s9, 256 }
 0x57e   :  { %p6521_p7 = scmp.ne.s32.totalorder %s7042_s9, %s6520_s16  ;;  %p6524_p8 = scmp.lt.u32.totalorder %s6520_s16, %s7042_s9 }
 0x580   :  { %p6526_p9 = pnand %p6524_p8, %p6521_p7 }
 0x582   :  { %6529 = shalt.err (!%p6526_p9)
}
 0x583   :  { %4841 = dma.vmem_to_hbm [thread:$0]  %s4839_s2, 256, %s7042_s9, [#allocation4]  }
 0x584   :  { %6540 = dma.done.wait [#allocation4], 256  }
 0x585   :  { %6541 = vsyncadd [#allocation4], 4294967040 }
 0x586   :  { %4845 = vsyncpa [#allocation3], 1 }
 0x587   :  { %4846 = vsyncpa [#allocation6], 1 }
 0x588   :  { %4847 = vsyncpa [#allocation9], 1 }
 0x589   :  { %4848 = vsyncpa [#allocation12], 1 }
 0x58a   :  { %4849 = vsyncpa [#allocation15], 1 }
 0x58b   :  { %4850 = vsyncpa [#allocation4], 1 }

</bundles_post_ra>
